<compile_context>
chip_gen: v7x
topology: tpu7x:2x2x1
jax: 0.10.0
libtpu: 0.0.40
codegen_flags: <defaults>
</compile_context>

<pallas_src>
import functools
import math

import jax
import jax.numpy as jnp
import numpy as np
from jax.experimental import pallas as pl
from jax.experimental.pallas import tpu as pltpu

_LANE = 128
_SUBLANE = 8


def _round_up(x, m):
    return (x + m - 1) // m * m


def _padded_bytes(rows, cols, itemsize):
    """VMEM footprint of a (rows, cols) tile, padded to (8, 128) granules."""
    return _round_up(max(rows, 1), _SUBLANE) * _round_up(max(cols, 1), _LANE) * itemsize


def _detect_multicore_tc():
    """True on chips with 2 TensorCores sharing the 'parallel' grid (v7x)."""
    try:
        kind = jax.devices()[0].device_kind.lower()
        return ("v7" in kind) or ("tpu7" in kind) or ("7x" in kind)
    except Exception:  # pragma: no cover - conservative fallback
        return False


_MULTI_TC = _detect_multicore_tc()


def _harmonic_kernel(tab_ref, x_ref, out_ref):
    """One row tile of the harmonic embedding.

    tab_ref: (2, 2*dim*n) f32 constant: row 0 = frequency of each output
             column, row 1 = bias (0 for the sin half, pi/2 for the cos half).
    x_ref:   (rt, dim)      input coordinates.
    out_ref: (rt, 2*dim*n)  sin half (dim-major, freq-minor) then cos half.
    """
    rt = out_ref.shape[0]
    dim = x_ref.shape[1]
    out_w = out_ref.shape[1]
    n = out_w // (2 * dim)

    # f32 compute regardless of I/O dtype (v5e has no bf16 VPU/EUP path and
    # the high harmonics are numerically fragile already).
    x = x_ref[...].astype(jnp.float32)          # (rt, dim)
    tab = tab_ref[...]                          # (2, out_w), f32
    freq_row = tab[0:1, :]                      # (1, out_w)
    bias_row = tab[1:2, :]                      # (1, out_w)

    # Column-replicated x in the final output column order:
    #   xg[:, h*dim*n + d*n + j] = x[:, d]   (h = 0: sin half, h = 1: cos half)
    cols = [jnp.broadcast_to(x[:, d:d + 1], (rt, n)) for d in range(dim)]
    xg = jnp.concatenate(cols + cols, axis=-1)  # (rt, out_w), lane-dense

    # Exact f32 per-lane multiply by the per-column frequency; the 0 / pi/2
    # bias folds cos into a single dense sin pass:
    #   sin half:  sin(x*f + 0)
    #   cos half:  sin(x*f + pi/2) == cos(x*f)   (<= 1/2 ulp(phase) deviation)
    # Tail grid blocks compute on whatever padding rows Pallas staged; those
    # rows are masked at writeback, so this is correct (and cheap).
    phase = xg * freq_row + bias_row
    out_ref[...] = jnp.sin(phase).astype(out_ref.dtype)


@functools.partial(jax.jit, static_argnames=("row_tile", "out_dtype"))
def harmonic_embedding(x, frequencies, *, row_tile=None, out_dtype=None):
    """x: [..., dim] -> [..., 2 * dim * n_harmonic], matching the torch module."""
    orig_shape = x.shape
    dim = orig_shape[-1]
    n = frequencies.shape[0]
    out_w = 2 * dim * n
    out_dtype = jnp.dtype(out_dtype) if out_dtype is not None else x.dtype

    x2 = x.reshape(-1, dim)
    n_rows = x2.shape[0]

    # Row tile: big enough to amortize the ~0.35us/grid-step overhead against
    # the HBM writeback of the block.  v7x's faster HBM wants a larger tile.
    if row_tile is None:
        row_tile = 2048 if _MULTI_TC else 1024
    rt = max(_SUBLANE,
             min(_round_up(row_tile, _SUBLANE), _round_up(n_rows, _SUBLANE)))
    blocks = pl.cdiv(n_rows, rt)

    # v7x: the ("parallel",) grid is sharded across 2 TensorCores; keep small
    # odd block counts even so neither core idles (no-op on v5e/v6e).
    if _MULTI_TC and 1 < blocks <= 16 and blocks % 2 == 1:
        rt = max(_SUBLANE, _round_up(pl.cdiv(n_rows, blocks + 1), _SUBLANE))
        blocks = pl.cdiv(n_rows, rt)

    # Constant table: row 0 = frequency of each output column (freq = omega0 *
    # 2**k is static at trace time), row 1 = bias (0 sin half, pi/2 cos half).
    freq = frequencies.astype(jnp.float32).reshape(-1)
    freq_full = jnp.tile(freq, 2 * dim)                           # (out_w,)
    bias = jnp.concatenate([
        jnp.zeros((dim * n,), jnp.float32),
        jnp.full((dim * n,), math.pi / 2, dtype=jnp.float32)])
    tab = jnp.stack([freq_full, bias])                            # (2, out_w)

    # VMEM budget with (8,128) padding: double-buffered in/out/table blocks
    # plus ~3 f32 out-block-sized in-kernel temporaries (xg / phase / sin
    # result) plus headroom.  Only raise the scoped limit when needed.
    x_bytes = _padded_bytes(rt, dim, jnp.dtype(x.dtype).itemsize)
    o_bytes = _padded_bytes(rt, out_w, jnp.dtype(out_dtype).itemsize)
    t_bytes = _padded_bytes(2, out_w, 4)
    working = (2 * (x_bytes + o_bytes + t_bytes)
               + 3 * _padded_bytes(rt, out_w, 4)
               + (1 << 20))
    extra = {}
    if working > 12 * 1024 * 1024:
        extra["vmem_limit_bytes"] = int(min(working, 100 * 1024 * 1024))

    out = pl.pallas_call(
        _harmonic_kernel,
        out_shape=jax.ShapeDtypeStruct((n_rows, out_w), out_dtype),
        grid_spec=pltpu.PrefetchScalarGridSpec(
            num_scalar_prefetch=0,
            grid=(blocks,),                      # boundary block masked by Pallas
            in_specs=[
                pl.BlockSpec((2, out_w), lambda i: (0, 0)),     # constant table
                pl.BlockSpec((rt, dim), lambda i: (i, 0)),      # x rows
            ],
            out_specs=pl.BlockSpec((rt, out_w), lambda i: (i, 0)),
        ),
        compiler_params=pltpu.CompilerParams(
            dimension_semantics=("parallel",), **extra),
    )(tab, x2)
    return out.reshape(*orig_shape[:-1], out_w)


def harmonic_embedding_ref(x, frequencies):
    """Pure-JAX reference matching the PyTorch forward exactly."""
    embed = (x[..., None] * frequencies).reshape(*x.shape[:-1], -1)
    return jnp.concatenate((jnp.sin(embed), jnp.cos(embed)), axis=-1)


def _check_low_harmonics(out, ref, dim, n, check_harmonics=12, rtol=1e-3, atol=1e-3):
    # Restrict the comparison to the lower frequencies: with n=60, omega0=0.1
    # the top frequencies reach ~5.8e16 and f32 sin/cos there is pure
    # range-reduction noise on ANY backend (accepted deviation from PyTorch).
    # The sin(x+pi/2) fusion adds <= 1/2 ulp(phase) to the cos half, so the
    # check stays where that is far below the tolerance (phase < ~1e3).
    cols = []
    for half in range(2):
        for d in range(dim):
            for j in range(check_harmonics):
                cols.append(half * dim * n + d * n + j)
    cols = np.array(cols)
    np.testing.assert_allclose(
        np.asarray(out)[..., cols], np.asarray(ref)[..., cols],
        rtol=rtol, atol=atol)


if __name__ == "__main__":
    n_harmonic_functions = 60
    omega0 = 0.1
    frequencies = omega0 * (2.0 ** jnp.arange(n_harmonic_functions, dtype=jnp.float32))
    dim = 3
    out_width = 2 * dim * n_harmonic_functions

    # Small NeRF-like input: batch=2, 16 points per batch, dim=3 coordinates.
    x_small = jax.random.normal(jax.random.PRNGKey(0), (2, 16, dim), dtype=jnp.float32)
    out_small = jax.block_until_ready(harmonic_embedding(x_small, frequencies))
    assert out_small.shape == (2, 16, out_width), out_small.shape
    assert bool(jnp.all(jnp.isfinite(out_small)))
    _check_low_harmonics(out_small, harmonic_embedding_ref(x_small, frequencies),
                         dim, n_harmonic_functions)

    # Row count (3000) that does NOT divide the row tile: exercises the cdiv
    # grid + masked tail block (and the even-block-count adjustment on v7x).
    x_big = jax.random.normal(jax.random.PRNGKey(1), (3, 1000, dim), dtype=jnp.float32)
    out_big = jax.block_until_ready(
        harmonic_embedding(x_big, frequencies, row_tile=1024))
    assert out_big.shape == (3, 1000, out_width), out_big.shape
    assert bool(jnp.all(jnp.isfinite(out_big)))
    _check_low_harmonics(out_big, harmonic_embedding_ref(x_big, frequencies),
                         dim, n_harmonic_functions)

    # Optional bf16 output (halves HBM writeback on v5e/v6e); loose tolerance.
    out_bf16 = jax.block_until_ready(
        harmonic_embedding(x_small, frequencies, out_dtype=jnp.bfloat16))
    assert out_bf16.shape == (2, 16, out_width), out_bf16.shape
    assert out_bf16.dtype == jnp.bfloat16
    _check_low_harmonics(out_bf16.astype(jnp.float32),
                         harmonic_embedding_ref(x_small, frequencies),
                         dim, n_harmonic_functions, rtol=2e-2, atol=2e-2)

    print("KERNEL_OK")
</pallas_src>

<mosaic_0001>
module attributes {stable_mosaic.version = 11 : i64} {
  func.func @_harmonic_kernel(%arg0: i32, %arg1: memref<2x360xf32, #tpu.memory_space<vmem>>, %arg2: memref<32x3xf32, #tpu.memory_space<vmem>>, %arg3: memref<32x360xf32, #tpu.memory_space<vmem>>) attributes {dimension_semantics = [#tpu.dimension_semantics<parallel>], iteration_bounds = array<i64: 1>, scalar_prefetch = 0 : i64, scratch_operands = 0 : i64, tpu.core_type = #tpu.core_type<tc>, window_params = [{pipeline_mode = #tpu.pipeline_mode<synchronous>, transform_indices = @transform_0, window_bounds = array<i64: 2, 360>}, {transform_indices = @transform_1, window_bounds = array<i64: 32, 3>}, {transform_indices = @transform_2, window_bounds = array<i64: 32, 360>}]} {
    %c0 = arith.constant 0 : index
    %c0_0 = arith.constant 0 : index
    %0 = vector.load %arg2[%c0, %c0_0] : memref<32x3xf32, #tpu.memory_space<vmem>>, vector<32x3xf32>
    %c0_1 = arith.constant 0 : index
    %c0_2 = arith.constant 0 : index
    %1 = vector.load %arg1[%c0_1, %c0_2] : memref<2x360xf32, #tpu.memory_space<vmem>>, vector<2x360xf32>
    %2 = vector.extract_strided_slice %1 {offsets = [0, 0], sizes = [1, 360], strides = [1, 1]} : vector<2x360xf32> to vector<1x360xf32>
    %3 = vector.extract_strided_slice %1 {offsets = [1, 0], sizes = [1, 360], strides = [1, 1]} : vector<2x360xf32> to vector<1x360xf32>
    %4 = vector.extract_strided_slice %0 {offsets = [0, 0], sizes = [32, 1], strides = [1, 1]} : vector<32x3xf32> to vector<32x1xf32>
    %5 = vector.shape_cast %4 : vector<32x1xf32> to vector<32x1xf32>
    %6 = vector.broadcast %5 : vector<32x1xf32> to vector<32x60xf32>
    %7 = vector.extract_strided_slice %0 {offsets = [0, 1], sizes = [32, 1], strides = [1, 1]} : vector<32x3xf32> to vector<32x1xf32>
    %8 = vector.shape_cast %7 : vector<32x1xf32> to vector<32x1xf32>
    %9 = vector.broadcast %8 : vector<32x1xf32> to vector<32x60xf32>
    %10 = vector.extract_strided_slice %0 {offsets = [0, 2], sizes = [32, 1], strides = [1, 1]} : vector<32x3xf32> to vector<32x1xf32>
    %11 = vector.shape_cast %10 : vector<32x1xf32> to vector<32x1xf32>
    %12 = vector.broadcast %11 : vector<32x1xf32> to vector<32x60xf32>
    %13 = tpu.concatenate %6, %9, %12, %6, %9, %12 in 1 : vector<32x60xf32>, vector<32x60xf32>, vector<32x60xf32>, vector<32x60xf32>, vector<32x60xf32>, vector<32x60xf32> -> vector<32x360xf32>
    %14 = vector.broadcast %2 : vector<1x360xf32> to vector<32x360xf32>
    %15 = arith.mulf %13, %14 : vector<32x360xf32>
    %16 = vector.broadcast %3 : vector<1x360xf32> to vector<32x360xf32>
    %17 = arith.addf %15, %16 : vector<32x360xf32>
    %18 = math.sin %17 : vector<32x360xf32>
    %c0_3 = arith.constant 0 : index
    %c0_4 = arith.constant 0 : index
    %19 = vector.load %arg3[%c0_3, %c0_4] : memref<32x360xf32, #tpu.memory_space<vmem>>, vector<32x360xf32>
    tpu.vector_store %arg3[%c0_3, %c0_4], %18 {strides = array<i32>} : memref<32x360xf32, #tpu.memory_space<vmem>>, vector<32x360xf32>,
    return
  }
  func.func @transform_0(%arg0: i32) -> (i32, i32) {
    %c0_i32 = arith.constant 0 : i32
    %c0_i32_0 = arith.constant 0 : i32
    %c0_i32_1 = arith.constant 0 : i32
    return %c0_i32, %c0_i32_0 : i32, i32
  }
  func.func @transform_1(%arg0: i32) -> (i32, i32) {
    %c0_i32 = arith.constant 0 : i32
    %c0_i32_0 = arith.constant 0 : i32
    return %arg0, %c0_i32 : i32, i32
  }
  func.func @transform_2(%arg0: i32) -> (i32, i32) {
    %c0_i32 = arith.constant 0 : i32
    %c0_i32_0 = arith.constant 0 : i32
    return %arg0, %c0_i32 : i32, i32
  }
}

</mosaic_0001>

<bundles_post_ra>
// kernel: tile.8
= control target key start
LH: loop header
LB: loop body
LE: loop exit
PB: predicated region body
PF: predicated region fallthrough
CT: control target
= control target key end

     0   :  { %s22_s0 = inlined_call_operand.vmem [shape: f32[60], index: 0, kind: input, shape index: {}]   ;;  %s23_s1 = inlined_call_operand.vmem [shape: f32[6,60], index: 1, kind: output, shape index: {}]  }
   0x1   :  { %v4_v0 = vld [vmem:[%s22_s0] ss:$0 sm:$0xff] }
   0x2   :  { %5 = vst [vmem:[%s23_s1] sm:$0xff] %v4_v0 }

// kernel: tile.9
= control target key start
LH: loop header
LB: loop body
LE: loop exit
PB: predicated region body
PF: predicated region fallthrough
CT: control target
= control target key end

     0   :  { %vm9_vm0 = vcmask 64512   ;;  %vm22_vm1 = vcmask 130048   ;;  %s84_s14 = smov 120   ;;  %s85_s15 = smov 60   ;;  %vm3_vm2 = vcmask 490496   ;;  %vm13_vm3 = vcmask 424960   ;;  %s132_s0 = inlined_call_operand.vmem [shape: f32[6,60], index: 0, kind: input, shape index: {}]   ;;  %s133_s1 = inlined_call_operand.vmem [shape: f32[1,360], index: 1, kind: output, shape index: {}]  }
   0x1   :  { %v70_v0 = vld [vmem:[%s132_s0 + $0x2] sm:$0x1]   ;;  %v74_v3 = vld [vmem:[%s132_s0 + $0x1] sm:$0x1]   ;;  %v72_v4 = vld [vmem:[%s132_s0 + $0x4] sm:$0x1]  }
   0x2   :  { %v71_v1 = vld [vmem:[%s132_s0 + $0x2] sm:$0x1]   ;;  %34 = vrot.lane.b32.xlu1 %v74_v3, %s85_s15  ;;  %v73_v5 = vld [vmem:[%s132_s0 + $0x4] sm:$0x1]   ;;  %v75_v7 = vld [vmem:[%s132_s0 + $0x3] sm:$0x1]  }
   0x3   :  { %v10_v2 = vsel %vm9_vm0, %v71_v1, %v70_v0  ;;  %v23_v6 = vsel %vm22_vm1, %v73_v5, %v72_v4  ;;  %v2_v8 = vld [vmem:[%s132_s0] sm:$0x1]   ;;  %s86_s22 = smov 112   ;;  %s87_s23 = smov 52   ;;  %v76_v9 = vld [vmem:[%s132_s0 + $0x5] sm:$0x1]  }
   0x4   :  { %11 = vrot.lane.b32.xlu0 %v10_v2, %s84_s14  ;;  %4 = vst.msk [vmem:[#allocation0] sm:$0x1] %vm3_vm2, %v2_v8   ;;  %s88_s0 = smov 44   ;;  %vm16_vm4 = vcmask 1048512   ;;  %vm36_vm5 = vcmask 982496   ;;  %vm26_vm6 = vcmask 359424  }
   0x5   :  { %vm29_vm7 = vcmask 1048448   ;;  %vm42_vm8 = vcmask 916896   ;;  %vm49_vm9 = vcmask 851296  }
   0x6   :  { %40 = vrot.lane.b32.xlu1 %v75_v7, %s87_s23 }
   0x8   :  { %24 = vrot.lane.b32.xlu0 %v23_v6, %s86_s22 }
   0xc   :  { %47 = vrot.lane.b32.xlu0 %v76_v9, %s88_s0 }
  0x74   :  { %v35_v11 = vpop.permute.xlu1 %34  }
  0x76   :  { %v12_v10 = vpop.permute.xlu0 %11  }
  0x77   :  { %15 = vst.msk [vmem:[#allocation0 + $0x8] sm:$0x1] %vm13_vm3, %v12_v10  }
  0x78   :  { %17 = vst.msk [vmem:[#allocation0] sm:$0x1] %vm16_vm4, %v12_v10   ;;  %v41_v13 = vpop.permute.xlu1 %40  }
  0x79   :  { %37 = vst.msk [vmem:[#allocation0] sm:$0x1] %vm36_vm5, %v35_v11  }
  0x7a   :  { %v25_v12 = vpop.permute.xlu0 %24  }
  0x7b   :  { %28 = vst.msk [vmem:[#allocation0 + $0x10] sm:$0x1] %vm26_vm6, %v25_v12  }
  0x7c   :  { %31 = vst.msk [vmem:[#allocation0 + $0x8] sm:$0x1] %vm29_vm7, %v25_v12  }
  0x7d   :  { %44 = vst.msk [vmem:[#allocation0 + $0x8] sm:$0x1] %vm42_vm8, %v41_v13  }
  0x7e   :  { %v48_v14 = vpop.permute.xlu0 %47  }
  0x7f   :  { %51 = vst.msk [vmem:[#allocation0 + $0x10] sm:$0x1] %vm49_vm9, %v48_v14  }
  0x80   :  { %v55_v15 = vld [vmem:[#allocation0] sm:$0x1] }
  0x81   :  { %57 = vst [vmem:[%s133_s1] sm:$0x1] %v55_v15 }
  0x84   :  { %v59_v16 = vld [vmem:[#allocation0 + $0x8] sm:$0x1] }
  0x85   :  { %77 = vst [vmem:[%s133_s1 + $0x1] sm:$0x1] %v59_v16 }
  0x86   :  { %v64_v17 = vld [vmem:[#allocation0 + $0x10] sm:$0x1] }
  0x87   :  { %78 = vst [vmem:[%s133_s1 + $0x2] sm:$0x1] %v64_v17 }

// kernel: harmonic_embedding.1
= control target key start
LH: loop header
LB: loop body
LE: loop exit
PB: predicated region body
PF: predicated region fallthrough
CT: control target
= control target key end

     0   :  { %v1636_v2 = vmov 0   ;;  %s2676_s0 = inlined_call_operand.vmem [shape: f32[2,360], index: 0, kind: input, shape index: {}]   ;;  %s2677_s1 = inlined_call_operand.vmem [shape: f32[32,3], index: 1, kind: input, shape index: {}]   ;;  %s2678_s2 = inlined_call_operand.hbm [shape: f32[32,360], index: 2, kind: output, shape index: {}]  }
   0x1   :  { %v14_v0 = vld [vmem:[%s2677_s1 + $0x10] sm:$0xff]  ;;  %v12_v1 = vld [vmem:[%s2677_s1] sm:$0xff]  ;;  %1559 = vset.pattern.permute.xlu1 %v1636_v2  ;;  %1558 = vset.pattern.permute.xlu0 %v1636_v2 }
   0x2   :  { %7 = vsyncpa [#allocation3], 0  ;;  %29 = vperm.xlu1 %1559, %v14_v0   ;;  %19 = vperm.xlu0 %1558, %v12_v1   ;;  %v15_v3 = vld [vmem:[%s2677_s1 + $0x18] sm:$0xff]  ;;  %v13_v4 = vld [vmem:[%s2677_s1 + $0x8] sm:$0xff]  ;;  %v1637_v5 = vmov 1   ;;  %v1638_v6 = vmov 2   ;;  %v95_v9 = vlaneseq }
   0x3   :  { %vm69_vm0 = vcmask 490496   ;;  %v16_v17 = vld [vmem:[%s2676_s0] sm:$0x3f]  ;;  %vm74_vm1 = vcmask 982016   ;;  %vm79_vm2 = vcmask 424960   ;;  %vm2679_vm3 = vcmask 359424  }
   0x4   :  { %v96_v12 = vshrl.u32 %v95_v9, 7  ;;  %vm84_vm4 = vcmask 916480   ;;  %s1645_s0 = smov [#allocation2]  }
   0x5   :  { %s1439_s18 = sshll.u32 %s1645_s0, 4  ;;  %s1440_s18 = int_to_ptr.vmem [resolvable:$true] %s1439_s18 }
   0x6   :  { %34 = vperm.xlu1 %1559, %v15_v3   ;;  %24 = vperm.xlu0 %1558, %v13_v4   ;;  %v97_v13 = vsub.s32 0, %v96_v12  ;;  %v105_v14 = vsub.s32 4, %v96_v12  ;;  %v101_v18 = vsub.s32 2, %v96_v12  ;;  %v136_v20 = vsub.s32 1, %v96_v12  ;;  %s1612_s19 = scalar_lea.vmem %s1440_s18, 1536  ;;  %p1617_p1 = scmp.lt.s32.totalorder %s1440_s18, %s1440_s18 }
   0x7   :  { %v140_v21 = vsub.s32 3, %v96_v12  ;;  %v144_v22 = vsub.s32 5, %v96_v12  ;;  %p1613_p0 = scmp.ne.s32.totalorder %s1440_s18, %s1612_s19  ;;  %p1618_p2 = scmp.lt.s32.totalorder %s1612_s19, %s1612_s19 }
   0x8   :  { %v98_v23 = vrot.slane %v16_v17, %v97_v13  ;;  %v106_v24 = vrot.slane %v16_v17, %v105_v14  ;;  %v102_v27 = vrot.slane %v16_v17, %v101_v18  ;;  %v137_v29 = vrot.slane %v16_v17, %v136_v20 }
   0x9   :  { %v141_v30 = vrot.slane %v16_v17, %v140_v21  ;;  %v145_v31 = vrot.slane %v16_v17, %v144_v22  ;;  %v1639_v21 = vmov 683565275   ;;  %p1619_p3 = por %p1618_p2, %p1617_p1 }
   0xa   :  { %1561 = vset.pattern.permute.xlu1 %v1637_v5  ;;  %1560 = vset.pattern.permute.xlu0 %v1637_v5  ;;  %v1695_v32 = vrot.slane %v98_v23, %v97_v13  ;;  %v1697_v33 = vrot.slane %v106_v24, %v97_v13  ;;  %v1699_v34 = vrot.slane %v102_v27, %v97_v13  ;;  %v1640_v27 = vmov 2475754826  }
   0xb   :  { %42 = vperm.xlu1 %1561, %v13_v4   ;;  %38 = vperm.xlu0 %1560, %v12_v1   ;;  %v1702_v36 = vrot.slane %v137_v29, %v136_v20  ;;  %v1704_v37 = vrot.slane %v141_v30, %v136_v20  ;;  %v1708_v40 = vrot.slane %v145_v31, %v136_v20  ;;  %v1641_v30 = vmov 2131351028   ;;  %p1620_p4 = pnand %p1619_p3, %p1613_p0 }
   0xf   :  { %46 = vperm.xlu1 %1561, %v14_v0   ;;  %50 = vperm.xlu0 %1560, %v15_v3  }
  0x13   :  { %1562 = vset.pattern.permute.xlu1 %v1638_v6  ;;  %1563 = vset.pattern.permute.xlu0 %v1638_v6 }
  0x14   :  { %54 = vperm.xlu1 %1562, %v12_v1   ;;  %58 = vperm.xlu0 %1563, %v13_v4  }
  0x18   :  { %62 = vperm.xlu1 %1562, %v14_v0  }
  0x1c   :  { %66 = vperm.xlu1 %1562, %v15_v3  }
  0x81   :  { %v1675_v7 = vpop.permute.xlu1 %29  ;;  %v20_v8 = vpop.permute.xlu0 %19 }
  0x85   :  { %v1677_v10 = vpop.permute.xlu1 %34  ;;  %v25_v11 = vpop.permute.xlu0 %24 }
  0x8a   :  { %v1679_v15 = vpop.permute.xlu1 %42  ;;  %v39_v16 = vpop.permute.xlu0 %38 }
  0x8b   :  { %v71_v19 = vsel %vm69_vm0, %v25_v11, %v1679_v15  ;;  %v70_v35 = vsel %vm69_vm0, %v20_v8, %v39_v16 }
  0x8e   :  { %v1686_v25 = vpop.permute.xlu1 %46  ;;  %v1688_v26 = vpop.permute.xlu0 %50 }
  0x8f   :  { %v1693_v28 = vsel %vm69_vm0, %v1675_v7, %v1686_v25 }
  0x93   :  { %v55_v38 = vpop.permute.xlu1 %54  ;;  %v1706_v39 = vpop.permute.xlu0 %58 }
  0x94   :  { %v75_v41 = vsel %vm74_vm1, %v70_v35, %v55_v38  ;;  %v80_v42 = vsel %vm79_vm2, %v55_v38, %v20_v8  ;;  %v90_v43 = vsel %vm2679_vm3, %v39_v16, %v55_v38  ;;  %v81_v47 = vsel %vm79_vm2, %v1706_v39, %v25_v11 }
  0x95   :  { %v85_v44 = vsel %vm84_vm4, %v80_v42, %v39_v16  ;;  %v122_v45 = vmul.f32 %v1695_v32, %v75_v41  ;;  %v124_v46 = vmul.f32 %v1697_v33, %v90_v43  ;;  %v1721_v49 = vsel %vm84_vm4, %v81_v47, %v1679_v15 }
  0x96   :  { %v123_v48 = vmul.f32 %v1699_v34, %v85_v44  ;;  %v76_v3 = vsel %vm74_vm1, %v71_v19, %v1706_v39  ;;  %v1642_v35 = vmov 2102212464   ;;  %v1643_v41 = vmov 920167782  }
  0x97   :  { %v1724_v50 = vadd.f32 %v1702_v36, %v122_v45  ;;  %v1730_v52 = vadd.f32 %v1708_v40, %v124_v46  ;;  %v1745_v14 = vmul.f32 %v1695_v32, %v76_v3 }
  0x98   :  { %v1727_v51 = vadd.f32 %v1704_v37, %v123_v48  ;;  %v1644_v48 = vmov 1326507024  }
  0x99   :  { %v173_v53 = vand.u32 2147483647, %v1724_v50  ;;  %v176_v54 = vand.u32 2139095040, %v1724_v50  ;;  %v384_v61 = vand.u32 2139095040, %v1730_v52  ;;  %v381_v6 = vand.u32 2147483647, %v1730_v52 }
  0x9a   :  { %v277_v55 = vand.u32 2147483647, %v1727_v51  ;;  %v280_v56 = vand.u32 2139095040, %v1727_v51 }
  0x9b   :  { %v177_v57 = vshrl.u32 %v176_v54, 23  ;;  %v180_v58 = vand.u32 8388607, %v173_v53  ;;  %v385_v0 = vshrl.u32 %v384_v61, 23  ;;  %v1753_v18 = vand.u32 8388607, %v381_v6 }
  0x9c   :  { %v281_v59 = vshrl.u32 %v280_v56, 23  ;;  %v284_v60 = vand.u32 8388607, %v277_v55 }
  0x9d   :  { %v1450_v62 = vadd.s32 4294967169, %v177_v57  ;;  %v181_v1 = vor.u32 8388608, %v180_v58  ;;  %v1458_v8 = vadd.s32 4294967169, %v385_v0 }
  0x9e   :  { %v1454_v63 = vadd.s32 4294967169, %v281_v59  ;;  %v285_v4 = vor.u32 8388608, %v284_v60 }
  0x9f   :  { %v183_v2 = vadd.s32 1, %v1450_v62  ;;  %v1747_v16 = vshll.u32 %v181_v1, 8  ;;  %v1755_v19 = vadd.s32 1, %v1458_v8 }
  0xa0   :  { %v287_v5 = vadd.s32 1, %v1454_v63  ;;  %v1749_v17 = vshll.u32 %v285_v4, 8 }
  0xa1   :  { %vm184_vm5 = vcmp.gt.s32.totalorder %v183_v2, 0  ;;  %vm392_vm11 = vcmp.gt.s32.totalorder %v1755_v19, 0 }
  0xa2   :  { %v185_v9 = vsel %vm184_vm5, %v183_v2, 0  ;;  %vm288_vm6 = vcmp.gt.s32.totalorder %v287_v5, 0 }
  0xa3   :  { %v186_v11 = vshrl.u32 %v185_v9, 5  ;;  %v187_v12 = vand.u32 31, %v185_v9  ;;  %v289_v13 = vsel %vm288_vm6, %v287_v5, 0 }
  0xa4   :  { %v1758_v23 = vshrl.u32 %v289_v13, 5  ;;  %v291_v24 = vand.u32 31, %v289_v13 }
  0xa5   :  { %v188_v20 = vsub.s32 32, %v187_v12  ;;  %v190_v22 = vshll.u32 %v1639_v21, %v187_v12  ;;  %v193_v29 = vshll.u32 %v1640_v27, %v187_v12  ;;  %v196_v31 = vshll.u32 %v1641_v30, %v187_v12 }
  0xa6   :  { %v199_v38 = vshll.u32 %v1642_v35, %v187_v12  ;;  %v202_v42 = vshll.u32 %v1643_v41, %v187_v12  ;;  %vm205_vm7 = vcmp.lt.s32.totalorder %v186_v11, 1  ;;  %vm206_vm8 = vcmp.lt.s32.totalorder %v186_v11, 2 }
  0xa7   :  { %v191_v43 = vshrl.u32 %v1640_v27, %v188_v20  ;;  %v194_v44 = vshrl.u32 %v1641_v30, %v188_v20  ;;  %v197_v45 = vshrl.u32 %v1642_v35, %v188_v20  ;;  %v189_v46 = vshrl.u32 %v1639_v21, %v188_v20 }
  0xa8   :  { %v200_v47 = vshrl.u32 %v1643_v41, %v188_v20  ;;  %v203_v54 = vshrl.u32 %v1644_v48, %v188_v20  ;;  %v292_v59 = vsub.s32 32, %v291_v24  ;;  %vm207_vm9 = vcmp.lt.s32.totalorder %v186_v11, 3 }
  0xa9   :  { %v192_v56 = vor.u32 %v191_v43, %v190_v22  ;;  %v195_v57 = vor.u32 %v194_v44, %v193_v29  ;;  %v198_v58 = vor.u32 %v197_v45, %v196_v31  ;;  %vm208_vm10 = vcmp.lt.s32.totalorder %v186_v11, 4 }
  0xaa   :  { %v201_v60 = vor.u32 %v200_v47, %v199_v38  ;;  %v204_v61 = vor.u32 %v203_v54, %v202_v42  ;;  %v294_v5 = vshll.u32 %v1639_v21, %v291_v24  ;;  %v295_v12 = vshrl.u32 %v1640_v27, %v292_v59 }
  0xab   :  { %v209_v62 = vsel %vm205_vm7, %v189_v46, %v192_v56  ;;  %v210_v63 = vsel %vm208_vm10, %v198_v58, 2102212464  ;;  %v213_v0 = vsel %vm205_vm7, %v192_v56, %v195_v57  ;;  %v217_v1 = vsel %vm205_vm7, %v195_v57, %v198_v58 }
  0xac   :  { %v211_v2 = vsel %vm207_vm9, %v195_v57, %v210_v63  ;;  %v214_v3 = vsel %vm208_vm10, %v201_v60, 920167782  ;;  %v218_v4 = vsel %vm208_vm10, %v204_v61, 1326507024  ;;  %v297_v13 = vshll.u32 %v1640_v27, %v291_v24 }
  0xad   :  { %v215_v8 = vsel %vm207_vm9, %v198_v58, %v214_v3  ;;  %v219_v9 = vsel %vm207_vm9, %v201_v60, %v218_v4  ;;  %v212_v20 = vsel %vm206_vm8, %v209_v62, %v211_v2  ;;  %v298_v31 = vshrl.u32 %v1641_v30, %v292_v59 }
  0xae   :  { %v216_v22 = vsel %vm206_vm8, %v213_v0, %v215_v8  ;;  %v220_v29 = vsel %vm206_vm8, %v217_v1, %v219_v9  ;;  %v296_v45 = vor.u32 %v295_v12, %v294_v5  ;;  %v300_v47 = vshll.u32 %v1641_v30, %v291_v24 }
  0xaf   :  { %v1782_v38 = vmul.u32.u64.low %v1747_v16, %v220_v29  ;;  %v1783_v42 = vmul.u32.u64.high %v1747_v16, %v220_v29, %v1782_v38  ;;  %v1786_v43 = vmul.u32.u64.low %v1747_v16, %v216_v22  ;;  %v1787_v44 = vmul.u32.u64.high %v1747_v16, %v216_v22, %v1786_v43 }
  0xb0   :  { %v299_v46 = vor.u32 %v298_v31, %v297_v13  ;;  %v301_v54 = vshrl.u32 %v1642_v35, %v292_v59  ;;  %v293_v56 = vshrl.u32 %v1639_v21, %v292_v59  ;;  %v303_v11 = vshll.u32 %v1642_v35, %v291_v24 }
  0xb1   :  { %v304_v57 = vshrl.u32 %v1643_v41, %v292_v59  ;;  %v307_v58 = vshrl.u32 %v1644_v48, %v292_v59  ;;  %v228_v60 = vmul.u32 %v1747_v16, %v212_v20  ;;  %v306_v62 = vshll.u32 %v1643_v41, %v291_v24 }
  0xb2   :  { %v302_v61 = vor.u32 %v301_v54, %v300_v47  ;;  %vm309_vm12 = vcmp.lt.s32.totalorder %v1758_v23, 1  ;;  %vm230_vm13 = vc.u32 %v1783_v42, %v1786_v43  ;;  %v231_v63 = vadd.s32 1, %v1787_v44 }
  0xb3   :  { %v305_v0 = vor.u32 %v304_v57, %v303_v11  ;;  %vm310_vm14 = vcmp.lt.s32.totalorder %v1758_v23, 2  ;;  %v308_v1 = vor.u32 %v307_v58, %v306_v62  ;;  %vm311_vm15 = vcmp.lt.s32.totalorder %v1758_v23, 3 }
  0xb4   :  { %vm312_vm5 = vcmp.lt.s32.totalorder %v1758_v23, 4  ;;  %v317_v59 = vsel %vm309_vm12, %v296_v45, %v299_v46  ;;  %v232_v16 = vsel %vm230_vm13, %v231_v63, %v1787_v44  ;;  %v321_v24 = vsel %vm309_vm12, %v299_v46, %v302_v61 }
  0xb5   :  { %v314_v2 = vsel %vm312_vm5, %v302_v61, 2102212464  ;;  %v318_v3 = vsel %vm312_vm5, %v305_v0, 920167782  ;;  %v233_v4 = vadd.s32 %v232_v16, %v228_v60  ;;  %v313_v5 = vsel %vm309_vm12, %v293_v56, %v296_v45 }
  0xb6   :  { %v319_v8 = vsel %vm311_vm15, %v302_v61, %v318_v3  ;;  %v322_v9 = vsel %vm312_vm5, %v308_v1, 1326507024  ;;  %v315_v12 = vsel %vm311_vm15, %v299_v46, %v314_v2  ;;  %v393_v22 = vsel %vm392_vm11, %v1755_v19, 0 }
  0xb7   :  { %v320_v13 = vsel %vm310_vm14, %v317_v59, %v319_v8  ;;  %v323_v20 = vsel %vm311_vm15, %v305_v0, %v322_v9  ;;  %v234_v29 = vadd.s32 536870912, %v233_v4  ;;  %v91_v47 = vsel %vm2679_vm3, %v1679_v15, %v1706_v39 }
  0xb8   :  { %v324_v31 = vsel %vm310_vm14, %v321_v24, %v323_v20  ;;  %v1812_v38 = vmul.u32.u64.low %v1749_v17, %v320_v13  ;;  %v1813_v44 = vmul.u32.u64.high %v1749_v17, %v320_v13, %v1812_v38  ;;  %v316_v19 = vsel %vm310_vm14, %v313_v5, %v315_v12 }
  0xb9   :  { %v1817_v45 = vmul.u32.u64.low %v1749_v17, %v324_v31  ;;  %v1818_v46 = vmul.u32.u64.high %v1749_v17, %v324_v31, %v1817_v45  ;;  %v235_v54 = vshrl.u32 %v234_v29, 30  ;;  %v395_v56 = vand.u32 31, %v393_v22 }
  0xba   :  { %v1827_v11 = vadd.f32 %v1702_v36, %v1745_v14  ;;  %v389_v57 = vor.u32 8388608, %v1753_v18  ;;  %v335_v60 = vadd.s32 1, %v1813_v44  ;;  %v332_v62 = vmul.u32 %v1749_v17, %v316_v19 }
  0xbb   :  { %v236_v58 = vshll.u32 %v235_v54, 30  ;;  %v396_v61 = vsub.s32 32, %v395_v56  ;;  %vm334_vm6 = vc.u32 %v1818_v46, %v1812_v38  ;;  %v1836_v15 = vmul.f32 %v1699_v34, %v1721_v49 }
  0xbc   :  { %v1839_v39 = vmul.f32 %v1697_v33, %v91_v47  ;;  %vm175_vm7 = vcmp.lt.s32.totalorder %v1724_v50, 0  ;;  %v336_v18 = vsel %vm334_vm6, %v335_v60, %v1813_v44  ;;  %v485_v23 = vand.u32 2147483647, %v1827_v11 }
  0xbd   :  { %v1842_v14 = vsub.s32 %v233_v4, %v236_v58  ;;  %v337_v63 = vadd.s32 %v336_v18, %v332_v62  ;;  %v399_v17 = vshrl.u32 %v1640_v27, %v396_v61  ;;  %v1847_v0 = vshll.u32 %v389_v57, 8 }
  0xbe   :  { %v488_v1 = vand.u32 2139095040, %v1827_v11  ;;  %v229_v49 = vadd.s32 %v1786_v43, %v1783_v42  ;;  %v402_v16 = vshrl.u32 %v1641_v30, %v396_v61  ;;  %v405_v2 = vshrl.u32 %v1642_v35, %v396_v61 }
  0xbf   :  { %v239_v59 = vsub.s32 0, %v1842_v14  ;;  %v259_v3 = vsub.s32 4, %v235_v54  ;;  %v338_v24 = vadd.s32 536870912, %v337_v63  ;;  %v1854_v4 = vshrl.u32 %v393_v22, 5 }
  0xc0   :  { %v398_v5 = vshll.u32 %v1639_v21, %v395_v56  ;;  %v401_v9 = vshll.u32 %v1640_v27, %v395_v56  ;;  %v404_v12 = vshll.u32 %v1641_v30, %v395_v56  ;;  %v408_v42 = vshrl.u32 %v1643_v41, %v396_v61 }
  0xc1   :  { %v1451_v8 = vmin.u32 %v239_v59, %v1842_v14  ;;  %v339_v43 = vshrl.u32 %v338_v24, 30  ;;  %v407_v20 = vshll.u32 %v1642_v35, %v395_v56  ;;  %v411_v29 = vshrl.u32 %v1644_v48, %v396_v61 }
  0xc2   :  { %v400_v13 = vor.u32 %v399_v17, %v398_v5  ;;  %vm1865_vm8 = vcmp.le.f32.partialorder %v173_v53, 0.7853982  ;;  %v403_v44 = vor.u32 %v402_v16, %v401_v9  ;;  %v406_v45 = vor.u32 %v405_v2, %v404_v12 }
  0xc3   :  { %v241_v31 = vclz %v1451_v8  ;;  %v410_v47 = vshll.u32 %v1643_v41, %v395_v56  ;;  %v340_v19 = vshll.u32 %v339_v43, 30  ;;  %v409_v57 = vor.u32 %v408_v42, %v407_v20 }
  0xc4   :  { %vm413_vm9 = vcmp.lt.s32.totalorder %v1854_v4, 1  ;;  %v489_v58 = vshrl.u32 %v488_v1, 23  ;;  %vm414_vm10 = vcmp.lt.s32.totalorder %v1854_v4, 2  ;;  %vm416_vm11 = vcmp.lt.s32.totalorder %v1854_v4, 4 }
  0xc5   :  { %v1452_v60 = vadd.s32 4294967294, %v241_v31  ;;  %v412_v62 = vor.u32 %v411_v29, %v410_v47  ;;  %v260_v53 = vsel %vm175_vm7, %v259_v3, %v235_v54  ;;  %vm279_vm12 = vcmp.lt.s32.totalorder %v1727_v51, 0 }
  0xc6   :  { %v1876_v18 = vsub.s32 %v337_v63, %v340_v19  ;;  %vm415_vm13 = vcmp.lt.s32.totalorder %v1854_v4, 3  ;;  %v422_v56 = vsel %vm416_vm11, %v409_v57, 920167782  ;;  %v397_v17 = vshrl.u32 %v1639_v21, %v396_v61 }
  0xc7   :  { %vm1453_vm14 = vcmp.lt.s32.totalorder %v1452_v60, 0  ;;  %v421_v1 = vsel %vm413_vm9, %v400_v13, %v403_v44  ;;  %v423_v59 = vsel %vm415_vm13, %v406_v45, %v422_v56  ;;  %v363_v2 = vsub.s32 4, %v339_v43 }
  0xc8   :  { %v244_v16 = vsel %vm1453_vm14, 0, %v1452_v60  ;;  %v343_v54 = vsub.s32 0, %v1876_v18  ;;  %v425_v63 = vsel %vm413_vm9, %v403_v44, %v406_v45  ;;  %v418_v5 = vsel %vm416_vm11, %v406_v45, 2102212464 }
  0xc9   :  { %v245_v3 = vsub.s32 32, %v244_v16  ;;  %v249_v24 = vsub.s32 4294967266, %v244_v16  ;;  %v426_v61 = vsel %vm416_vm11, %v412_v62, 1326507024  ;;  %v246_v8 = vshll.u32 %v1842_v14, %v244_v16 }
  0xca   :  { %v1455_v9 = vmin.u32 %v343_v54, %v1876_v18  ;;  %v424_v12 = vsel %vm414_vm10, %v421_v1, %v423_v59  ;;  %v427_v42 = vsel %vm415_vm13, %v409_v57, %v426_v61  ;;  %v1462_v47 = vadd.s32 4294967169, %v489_v58 }
  0xcb   :  { %v247_v20 = vshrl.u32 %v229_v49, %v245_v3  ;;  %v250_v29 = vadd.s32 127, %v249_v24  ;;  %v428_v31 = vsel %vm414_vm10, %v425_v63, %v427_v42  ;;  %v262_v45 = vsel %vm1865_vm8, 0, %v260_v53 }
  0xcc   :  { %v345_v19 = vclz %v1455_v9  ;;  %v417_v14 = vsel %vm413_vm9, %v397_v17, %v400_v13  ;;  %v419_v60 = vsel %vm415_vm13, %v403_v44, %v418_v5  ;;  %vm1913_vm15 = vcmp.le.f32.partialorder %v277_v55, 0.7853982 }
  0xcd   :  { %v248_v62 = vor.u32 %v247_v20, %v246_v8  ;;  %v251_v56 = vshll.u32 %v250_v29, 23  ;;  %v1908_v57 = vmul.u32.u64.low %v1847_v0, %v428_v31  ;;  %v1909_v49 = vmul.u32.u64.high %v1847_v0, %v428_v31, %v1908_v57 }
  0xce   :  { %v1456_v53 = vadd.s32 4294967294, %v345_v19  ;;  %v1918_v1 = vmul.u32.u64.low %v1847_v0, %v424_v12  ;;  %v1919_v59 = vmul.u32.u64.high %v1847_v0, %v424_v12, %v1918_v1  ;;  %v364_v44 = vsel %vm279_vm12, %v363_v2, %v339_v43 }
  0xcf   :  { %v252_v13 = vor.u32 4788187, %v251_v56  ;;  %v492_v17 = vand.u32 8388607, %v485_v23  ;;  %v495_v16 = vadd.s32 1, %v1462_v47  ;;  %v266_v54 = vadd.s32 3, %v262_v45 }
  0xd0   :  { %v333_v55 = vadd.s32 %v1812_v38, %v1818_v46  ;;  %vm1457_vm5 = vcmp.lt.s32.totalorder %v1456_v53, 0  ;;  %v420_v63 = vsel %vm414_vm10, %v417_v14, %v419_v60  ;;  %v255_v24 = vcvt.s32.f32 %v248_v62 }
  0xd1   :  { %v253_v3 = vand.u32 2147483647, %v252_v13  ;;  %v348_v5 = vsel %vm1457_vm5, 0, %v1456_v53  ;;  %vm438_vm6 = vc.u32 %v1909_v49, %v1918_v1  ;;  %v366_v2 = vsel %vm1913_vm15, 0, %v364_v44 }
  0xd2   :  { %v349_v61 = vsub.s32 32, %v348_v5  ;;  %v353_v43 = vsub.s32 4294967266, %v348_v5  ;;  %v439_v8 = vadd.s32 1, %v1919_v59  ;;  %v350_v38 = vshll.u32 %v1876_v18, %v348_v5 }
  0xd3   :  { %v256_v9 = vmul.f32 %v255_v24, %v253_v3  ;;  %v436_v46 = vmul.u32 %v1847_v0, %v420_v63  ;;  %vm496_vm9 = vcmp.gt.s32.totalorder %v495_v16, 0  ;;  %v370_v31 = vadd.s32 3, %v366_v2 }
  0xd4   :  { %v351_v4 = vshrl.u32 %v333_v55, %v349_v61  ;;  %v354_v12 = vadd.s32 127, %v353_v43  ;;  %v440_v42 = vsel %vm438_vm6, %v439_v8, %v1919_v59  ;;  %v497_v20 = vsel %vm496_vm9, %v495_v16, 0 }
  0xd5   :  { %v257_v29 = vxor.u32 2147483648, %v256_v9  ;;  %v441_v47 = vadd.s32 %v440_v42, %v436_v46  ;;  %v499_v45 = vand.u32 31, %v497_v20  ;;  %v493_v60 = vor.u32 8388608, %v492_v17 }
  0xd6   :  { %v352_v19 = vor.u32 %v351_v4, %v350_v38  ;;  %v355_v14 = vshll.u32 %v354_v12, 23  ;;  %v1942_v0 = vadd.f32 %v1704_v37, %v1836_v15  ;;  %v1949_v59 = vadd.f32 %v1708_v40, %v1839_v39 }
  0xd7   :  { %v258_v62 = vsel %vm175_vm7, %v257_v29, %v256_v9  ;;  %v442_v56 = vadd.s32 536870912, %v441_v47  ;;  %v500_v18 = vsub.s32 32, %v499_v45  ;;  %v1951_v13 = vand.u32 3, %v266_v54 }
  0xd8   :  { %v261_v57 = vsel %vm1865_vm8, %v1724_v50, %v258_v62  ;;  %v356_v53 = vor.u32 4788187, %v355_v14  ;;  %v1953_v44 = vand.u32 3, %v370_v31  ;;  %v359_v15 = vcvt.s32.f32 %v352_v19 }
  0xd9   :  { %1564 = vcosq.f32 %v261_v57  ;;  %v443_v17 = vshrl.u32 %v442_v56, 30  ;;  %v1955_v55 = vshll.u32 %v493_v60, 8  ;;  %vm383_vm7 = vcmp.lt.s32.totalorder %v1730_v52, 0 }
  0xda   :  { %1566 = vsinq.f32 %v261_v57  ;;  %v357_v16 = vand.u32 2147483647, %v356_v53  ;;  %v503_v63 = vshrl.u32 %v1640_v27, %v500_v18  ;;  %v506_v3 = vshrl.u32 %v1641_v30, %v500_v18 }
  0xdb   :  { %v444_v22 = vshll.u32 %v443_v17, 30  ;;  %v592_v39 = vand.u32 2139095040, %v1942_v0  ;;  %v509_v54 = vshrl.u32 %v1642_v35, %v500_v18  ;;  %v511_v5 = vshll.u32 %v1642_v35, %v499_v45 }
  0xdc   :  { %v360_v24 = vmul.f32 %v359_v15, %v357_v16  ;;  %v512_v61 = vshrl.u32 %v1643_v41, %v500_v18  ;;  %vm272_vm8 = vcmp.eq.s32.totalorder %v1951_v13, 2  ;;  %v1967_v2 = vshrl.u32 %v497_v20, 5 }
  0xdd   :  { %v1965_v43 = vsub.s32 %v441_v47, %v444_v22  ;;  %v502_v8 = vshll.u32 %v1639_v21, %v499_v45  ;;  %v505_v9 = vshll.u32 %v1640_v27, %v499_v45  ;;  %vm269_vm10 = vcmp.eq.s32.totalorder %v1951_v13, 0 }
  0xde   :  { %v361_v38 = vxor.u32 2147483648, %v360_v24  ;;  %v508_v46 = vshll.u32 %v1641_v30, %v499_v45  ;;  %v513_v4 = vor.u32 %v512_v61, %v511_v5  ;;  %v515_v12 = vshrl.u32 %v1644_v48, %v500_v18 }
  0xdf   :  { %vm268_vm11 = vcmp.lt.s32.totalorder %v1951_v13, 2  ;;  %v437_v42 = vadd.s32 %v1918_v1, %v1909_v49  ;;  %v447_v20 = vsub.s32 0, %v1965_v43  ;;  %v504_v29 = vor.u32 %v503_v63, %v502_v8 }
  0xe0   :  { %v507_v31 = vor.u32 %v506_v3, %v505_v9  ;;  %vm265_vm13 = vweird.f32 %v1724_v50  ;;  %v362_v47 = vsel %vm279_vm12, %v361_v38, %v360_v24  ;;  %v467_v19 = vsub.s32 4, %v443_v17 }
  0xe1   :  { %v510_v14 = vor.u32 %v509_v54, %v508_v46  ;;  %v514_v60 = vshll.u32 %v1643_v41, %v499_v45  ;;  %v365_v62 = vsel %vm1913_vm15, %v1727_v51, %v362_v47  ;;  %v1459_v56 = vmin.u32 %v447_v20, %v1965_v43 }
  0xe2   :  { %vm520_vm14 = vcmp.lt.s32.totalorder %v1967_v2, 4  ;;  %v593_v49 = vshrl.u32 %v592_v39, 23  ;;  %1568 = vcosq.f32 %v365_v62  ;;  %vm517_vm5 = vcmp.lt.s32.totalorder %v1967_v2, 1 }
  0xe3   :  { %v516_v1 = vor.u32 %v515_v12, %v514_v60  ;;  %v526_v57 = vsel %vm520_vm14, %v513_v4, 920167782  ;;  %v1565_v53 = vpop.eup %1564  ;;  %1570 = vsinq.f32 %v365_v62  ;;  %v449_v16 = vclz %v1459_v56 }
  0xe4   :  { %vm519_vm12 = vcmp.lt.s32.totalorder %v1967_v2, 3  ;;  %v525_v58 = vsel %vm517_vm5, %v504_v29, %v507_v31  ;;  %v1567_v45 = vpop.eup %1566  ;;  %v273_v15 = vxor.u32 2147483648, %v1565_v53  ;;  %v468_v22 = vsel %vm383_vm7, %v467_v19, %v443_v17 }
  0xe5   :  { %v501_v63 = vshrl.u32 %v1639_v21, %v500_v18  ;;  %v527_v3 = vsel %vm519_vm12, %v510_v14, %v526_v57  ;;  %v270_v39 = vxor.u32 2147483648, %v1567_v45  ;;  %vm2000_vm15 = vcmp.le.f32.partialorder %v381_v6, 0.7853982 }
  0xe6   :  { %v1460_v54 = vadd.s32 4294967294, %v449_v16  ;;  %vm518_vm6 = vcmp.lt.s32.totalorder %v1967_v2, 2  ;;  %v522_v5 = vsel %vm520_vm14, %v510_v14, 2102212464  ;;  %v274_v17 = vsel %vm272_vm8, %v273_v15, %v1567_v45 }
  0xe7   :  { %v528_v18 = vsel %vm518_vm6, %v525_v58, %v527_v3  ;;  %v529_v61 = vsel %vm517_vm5, %v507_v31, %v510_v14  ;;  %v530_v6 = vsel %vm520_vm14, %v516_v1, 1326507024  ;;  %v271_v8 = vsel %vm269_vm10, %v1565_v53, %v270_v39 }
  0xe8   :  { %vm1461_vm9 = vcmp.lt.s32.totalorder %v1460_v54, 0  ;;  %v531_v9 = vsel %vm519_vm12, %v513_v4, %v530_v6  ;;  %v1466_v38 = vadd.s32 4294967169, %v593_v49  ;;  %v275_v46 = vsel %vm268_vm11, %v271_v8, %v274_v17 }
  0xe9   :  { %v452_v12 = vsel %vm1461_vm9, 0, %v1460_v54  ;;  %v521_v20 = vsel %vm517_vm5, %v501_v63, %v504_v29  ;;  %v532_v47 = vsel %vm518_vm6, %v529_v61, %v531_v9  ;;  %v276_v19 = vsel %vm265_vm13, nan, %v275_v46 }
  0xea   :  { %vm369_vm8 = vweird.f32 %v1727_v51  ;;  %v453_v14 = vsub.s32 32, %v452_v12  ;;  %v457_v60 = vsub.s32 4294967266, %v452_v12  ;;  %v523_v4 = vsel %vm519_vm12, %v507_v31, %v522_v5  ;;  %1421 = vst [vmem:[#allocation2] sm:$0xff] %v276_v19 }
  0xeb   :  { %v2031_v13 = vmul.u32.u64.low %v1955_v55, %v532_v47  ;;  %v2032_v62 = vmul.u32.u64.high %v1955_v55, %v532_v47, %v2031_v13  ;;  %v2035_v29 = vmul.u32.u64.low %v1955_v55, %v528_v18  ;;  %v2036_v56 = vmul.u32.u64.high %v1955_v55, %v528_v18, %v2035_v29 }
  0xec   :  { %v454_v50 = vshll.u32 %v1965_v43, %v452_v12  ;;  %v455_v49 = vshrl.u32 %v437_v42, %v453_v14  ;;  %v458_v1 = vadd.s32 127, %v457_v60  ;;  %v599_v57 = vadd.s32 1, %v1466_v38  ;;  %v1569_v53 = vpop.eup %1568 }
  0xed   :  { %vm373_vm10 = vcmp.eq.s32.totalorder %v1953_v44, 0  ;;  %vm376_vm11 = vcmp.eq.s32.totalorder %v1953_v44, 2  ;;  %v524_v31 = vsel %vm518_vm6, %v521_v20, %v523_v4  ;;  %v589_v16 = vand.u32 2147483647, %v1942_v0  ;;  %v1571_v58 = vpop.eup %1570 }
  0xee   :  { %v377_v45 = vxor.u32 2147483648, %v1569_v53  ;;  %v456_v15 = vor.u32 %v455_v49, %v454_v50  ;;  %v459_v63 = vshll.u32 %v458_v1, 23  ;;  %vm600_vm13 = vcmp.gt.s32.totalorder %v599_v57, 0 }
  0xef   :  { %v374_v3 = vxor.u32 2147483648, %v1571_v58  ;;  %v470_v43 = vsel %vm2000_vm15, 0, %v468_v22  ;;  %vm542_vm14 = vc.u32 %v2032_v62, %v2035_v29  ;;  %v543_v42 = vadd.s32 1, %v2036_v56 }
  0xf0   :  { %v378_v39 = vsel %vm376_vm11, %v377_v45, %v1571_v58  ;;  %v460_v54 = vor.u32 4788187, %v459_v63  ;;  %v540_v2 = vmul.u32 %v1955_v55, %v524_v31  ;;  %v601_v5 = vsel %vm600_vm13, %v599_v57, 0 }
  0xf1   :  { %vm372_vm5 = vcmp.lt.s32.totalorder %v1953_v44, 2  ;;  %v375_v17 = vsel %vm373_vm10, %v1569_v53, %v374_v3  ;;  %v544_v18 = vsel %vm542_vm14, %v543_v42, %v2036_v56  ;;  %v603_v61 = vand.u32 31, %v601_v5 }
  0xf2   :  { %v379_v6 = vsel %vm372_vm5, %v375_v17, %v378_v39  ;;  %v461_v22 = vand.u32 2147483647, %v460_v54  ;;  %v463_v8 = vcvt.s32.f32 %v456_v15  ;;  %v545_v9 = vadd.s32 %v544_v18, %v540_v2 }
  0xf3   :  { %v380_v38 = vsel %vm369_vm8, nan, %v379_v6  ;;  %v474_v46 = vadd.s32 3, %v470_v43  ;;  %v596_v55 = vand.u32 8388607, %v589_v16  ;;  %v604_v12 = vsub.s32 32, %v603_v61 }
  0xf4   :  { %v464_v20 = vmul.f32 %v463_v8, %v461_v22  ;;  %1422 = vst [vmem:[#allocation2 + $0x8] sm:$0xff] %v380_v38  ;;  %v546_v47 = vadd.s32 536870912, %v545_v9  ;;  %v602_v44 = vshrl.u32 %v601_v5, 5  ;;  %v606_v19 = vshll.u32 %v1639_v21, %v603_v61 }
  0xf5   :  { %v607_v14 = vshrl.u32 %v1640_v27, %v604_v12  ;;  %v609_v60 = vshll.u32 %v1640_v27, %v603_v61  ;;  %v610_v4 = vshrl.u32 %v1641_v30, %v604_v12  ;;  %v613_v51 = vshrl.u32 %v1642_v35, %v604_v12 }
  0xf6   :  { %v465_v13 = vxor.u32 2147483648, %v464_v20  ;;  %v547_v56 = vshrl.u32 %v546_v47, 30  ;;  %v612_v50 = vshll.u32 %v1641_v30, %v603_v61  ;;  %v616_v49 = vshrl.u32 %v1643_v41, %v604_v12 }
  0xf7   :  { %v608_v1 = vor.u32 %v607_v14, %v606_v19  ;;  %v615_v57 = vshll.u32 %v1642_v35, %v603_v61  ;;  %v618_v53 = vshll.u32 %v1643_v41, %v603_v61  ;;  %v619_v31 = vshrl.u32 %v1644_v48, %v604_v12 }
  0xf8   :  { %v466_v58 = vsel %vm383_vm7, %v465_v13, %v464_v20  ;;  %v548_v45 = vshll.u32 %v547_v56, 30  ;;  %v611_v15 = vor.u32 %v610_v4, %v609_v60  ;;  %v614_v63 = vor.u32 %v613_v51, %v612_v50 }
  0xf9   :  { %v469_v3 = vsel %vm2000_vm15, %v1730_v52, %v466_v58  ;;  %v2074_v43 = vand.u32 3, %v474_v46  ;;  %v617_v42 = vor.u32 %v616_v49, %v615_v57  ;;  %v620_v39 = vor.u32 %v619_v31, %v618_v53 }
  0xfa   :  { %1572 = vcosq.f32 %v469_v3  ;;  %v2076_v54 = vsub.s32 %v545_v9, %v548_v45  ;;  %v597_v2 = vor.u32 8388608, %v596_v55  ;;  %v696_v5 = vand.u32 2139095040, %v1949_v59 }
  0xfb   :  { %1574 = vsinq.f32 %v469_v3  ;;  %vm487_vm7 = vcmp.lt.s32.totalorder %v1827_v11, 0  ;;  %v605_v17 = vshrl.u32 %v1639_v21, %v604_v12  ;;  %vm621_vm12 = vcmp.lt.s32.totalorder %v602_v44, 1 }
  0xfc   :  { %vm624_vm6 = vcmp.lt.s32.totalorder %v602_v44, 4  ;;  %v551_v24 = vsub.s32 0, %v2076_v54  ;;  %vm623_vm15 = vcmp.lt.s32.totalorder %v602_v44, 3  ;;  %v629_v61 = vsel %vm621_vm12, %v608_v1, %v611_v15 }
  0xfd   :  { %v626_v18 = vsel %vm624_vm6, %v614_v63, 2102212464  ;;  %v625_v6 = vsel %vm621_vm12, %v605_v17, %v608_v1  ;;  %v630_v8 = vsel %vm624_vm6, %v617_v42, 920167782  ;;  %v634_v9 = vsel %vm624_vm6, %v620_v39, 1326507024 }
  0xfe   :  { %v627_v22 = vsel %vm623_vm15, %v611_v15, %v626_v18  ;;  %v1463_v38 = vmin.u32 %v551_v24, %v2076_v54  ;;  %vm622_vm9 = vcmp.lt.s32.totalorder %v602_v44, 2  ;;  %v631_v46 = vsel %vm623_vm15, %v614_v63, %v630_v8 }
  0xff   :  { %v633_v55 = vsel %vm621_vm12, %v611_v15, %v614_v63  ;;  %v632_v20 = vsel %vm622_vm9, %v629_v61, %v631_v46  ;;  %v635_v47 = vsel %vm623_vm15, %v617_v42, %v634_v9  ;;  %v637_v19 = vshll.u32 %v597_v2, 8  ;;  %v2116_v9 = vpop.permute.xlu1 %62 }
 0x100   :  { %v697_v12 = vshrl.u32 %v696_v5, 23  ;;  %vm1423_vm8 = vcmask 850944   ;;  %vm2085_vm10 = vcmp.le.f32.partialorder %v485_v23, 0.7853982  ;;  %v553_v60 = vclz %v1463_v38 }
 0x101   :  { %v571_v4 = vsub.s32 4, %v547_v56  ;;  %v628_v51 = vsel %vm622_vm9, %v625_v6, %v627_v22  ;;  %vm473_vm11 = vweird.f32 %v1730_v52  ;;  %v636_v13 = vsel %vm622_vm9, %v633_v55, %v635_v47 }
 0x102   :  { %v2090_v44 = vmul.u32.u64.low %v637_v19, %v632_v20  ;;  %v2091_v50 = vmul.u32.u64.high %v637_v19, %v632_v20, %v2090_v44  ;;  %v1470_v49 = vadd.s32 4294967169, %v697_v12  ;;  %v1464_v1 = vadd.s32 4294967294, %v553_v60 }
 0x103   :  { %v2094_v57 = vmul.u32.u64.low %v637_v19, %v636_v13  ;;  %v2095_v53 = vmul.u32.u64.high %v637_v19, %v636_v13, %v2094_v57  ;;  %v693_v23 = vand.u32 2147483647, %v1949_v59  ;;  %vm476_vm13 = vcmp.lt.s32.totalorder %v2074_v43, 2 }
 0x104   :  { %vm477_vm14 = vcmp.eq.s32.totalorder %v2074_v43, 0  ;;  %vm480_vm5 = vcmp.eq.s32.totalorder %v2074_v43, 2  ;;  %v703_v31 = vadd.s32 1, %v1470_v49  ;;  %v1573_v58 = vpop.eup %1572  ;;  %v541_v45 = vadd.s32 %v2035_v29, %v2032_v62 }
 0x105   :  { %vm1465_vm12 = vcmp.lt.s32.totalorder %v1464_v1, 0  ;;  %v572_v15 = vsel %vm487_vm7, %v571_v4, %v547_v56  ;;  %v644_v63 = vmul.u32 %v637_v19, %v628_v51  ;;  %v1575_v3 = vpop.eup %1574  ;;  %v481_v42 = vxor.u32 2147483648, %v1573_v58 }
 0x106   :  { %v556_v39 = vsel %vm1465_vm12, 0, %v1464_v1  ;;  %v647_v2 = vadd.s32 1, %v2091_v50  ;;  %vm704_vm6 = vcmp.gt.s32.totalorder %v703_v31, 0  ;;  %v478_v5 = vxor.u32 2147483648, %v1575_v3 }
 0x107   :  { %v557_v17 = vsub.s32 32, %v556_v39  ;;  %v561_v24 = vsub.s32 4294967266, %v556_v39  ;;  %v700_v18 = vand.u32 8388607, %v693_v23  ;;  %v482_v62 = vsel %vm480_vm5, %v481_v42, %v1575_v3 }
 0x108   :  { %v558_v29 = vshll.u32 %v2076_v54, %v556_v39  ;;  %vm646_vm15 = vc.u32 %v2095_v53, %v2090_v44  ;;  %v705_v56 = vsel %vm704_vm6, %v703_v31, 0  ;;  %v479_v61 = vsel %vm477_vm14, %v1573_v58, %v478_v5 }
 0x109   :  { %v559_v6 = vshrl.u32 %v541_v45, %v557_v17  ;;  %v562_v22 = vadd.s32 127, %v561_v24  ;;  %v648_v8 = vsel %vm646_vm15, %v647_v2, %v2091_v50  ;;  %v483_v38 = vsel %vm476_vm13, %v479_v61, %v482_v62 }
 0x10a   :  { %v574_v46 = vsel %vm2085_vm10, 0, %v572_v15  ;;  %v649_v54 = vadd.s32 %v648_v8, %v644_v63  ;;  %v707_v55 = vand.u32 31, %v705_v56  ;;  %v484_v20 = vsel %vm473_vm11, nan, %v483_v38 }
 0x10b   :  { %v560_v47 = vor.u32 %v559_v6, %v558_v29  ;;  %v563_v19 = vshll.u32 %v562_v22, 23  ;;  %1424 = vst.msk [vmem:[#allocation2 + $0x10] sm:$0xff] %vm1423_vm8, %v484_v20  ;;  %v77_v4 = vsel %vm74_vm1, %v1693_v28, %v2116_v9  ;;  %v578_v51 = vadd.s32 3, %v574_v46 }
 0x10c   :  { %v650_v12 = vadd.s32 536870912, %v649_v54  ;;  %v708_v60 = vsub.s32 32, %v707_v55  ;;  %v701_v13 = vor.u32 8388608, %v700_v18  ;;  %v706_v50 = vshrl.u32 %v705_v56, 5 }
 0x10d   :  { %v564_v43 = vor.u32 4788187, %v563_v19  ;;  %v567_v49 = vcvt.s32.f32 %v560_v47  ;;  %v719_v45 = vshll.u32 %v1642_v35, %v707_v55  ;;  %v710_v63 = vshll.u32 %v1639_v21, %v707_v55 }
 0x10e   :  { %v2128_v1 = vshrl.u32 %v650_v12, 30  ;;  %v711_v52 = vshrl.u32 %v1640_v27, %v708_v60  ;;  %v714_v57 = vshrl.u32 %v1641_v30, %v708_v60  ;;  %v717_v58 = vshrl.u32 %v1642_v35, %v708_v60 }
 0x10f   :  { %v565_v31 = vand.u32 2147483647, %v564_v43  ;;  %v720_v15 = vshrl.u32 %v1643_v41, %v708_v60  ;;  %v713_v3 = vshll.u32 %v1640_v27, %v707_v55  ;;  %v716_v42 = vshll.u32 %v1641_v30, %v707_v55 }
 0x110   :  { %v652_v28 = vshll.u32 %v2128_v1, 30  ;;  %v723_v5 = vshrl.u32 %v1644_v48, %v708_v60  ;;  %v82_v17 = vsel %vm79_vm2, %v2116_v9, %v1675_v7  ;;  %v712_v18 = vor.u32 %v711_v52, %v710_v63 }
 0x111   :  { %v568_v39 = vmul.f32 %v567_v49, %v565_v31  ;;  %v721_v2 = vor.u32 %v720_v15, %v719_v45  ;;  %v715_v62 = vor.u32 %v714_v57, %v713_v3  ;;  %v718_v29 = vor.u32 %v717_v58, %v716_v42 }
 0x112   :  { %v2143_v24 = vsub.s32 %v649_v54, %v652_v28  ;;  %v2145_v61 = vand.u32 3, %v578_v51  ;;  %v722_v6 = vshll.u32 %v1643_v41, %v707_v55  ;;  %v128_v22 = vmul.f32 %v1695_v32, %v77_v4 }
 0x113   :  { %v569_v56 = vxor.u32 2147483648, %v568_v39  ;;  %vm725_vm9 = vcmp.lt.s32.totalorder %v706_v50, 1  ;;  %vm728_vm11 = vcmp.lt.s32.totalorder %v706_v50, 4  ;;  %v741_v38 = vshll.u32 %v701_v13, 8 }
 0x114   :  { %v655_v8 = vsub.s32 0, %v2143_v24  ;;  %v724_v46 = vor.u32 %v723_v5, %v722_v6  ;;  %vm727_vm13 = vcmp.lt.s32.totalorder %v706_v50, 3  ;;  %v734_v54 = vsel %vm728_vm11, %v721_v2, 920167782 }
 0x115   :  { %v570_v7 = vsel %vm487_vm7, %v569_v56, %v568_v39  ;;  %v730_v47 = vsel %vm728_vm11, %v718_v29, 2102212464  ;;  %v733_v19 = vsel %vm725_vm9, %v712_v18, %v715_v62  ;;  %v675_v12 = vsub.s32 4, %v2128_v1 }
 0x116   :  { %v573_v20 = vsel %vm2085_vm10, %v1827_v11, %v570_v7  ;;  %v1467_v55 = vmin.u32 %v655_v8, %v2143_v24  ;;  %v709_v4 = vshrl.u32 %v1639_v21, %v708_v60  ;;  %v735_v43 = vsel %vm727_vm13, %v718_v29, %v734_v54 }
 0x117   :  { %1576 = vcosq.f32 %v573_v20  ;;  %vm726_vm7 = vcmp.lt.s32.totalorder %v706_v50, 2  ;;  %v737_v13 = vsel %vm725_vm9, %v715_v62, %v718_v29  ;;  %v731_v49 = vsel %vm727_vm13, %v715_v62, %v730_v47 }
 0x118   :  { %1578 = vsinq.f32 %v573_v20  ;;  %v657_v51 = vclz %v1467_v55  ;;  %v729_v14 = vsel %vm725_vm9, %v709_v4, %v712_v18  ;;  %v736_v52 = vsel %vm726_vm7, %v733_v19, %v735_v43 }
 0x119   :  { %v738_v57 = vsel %vm728_vm11, %v724_v46, 1326507024  ;;  %v2167_v45 = vmul.u32.u64.low %v741_v38, %v736_v52  ;;  %v2168_v15 = vmul.u32.u64.high %v741_v38, %v736_v52, %v2167_v45  ;;  %vm591_vm10 = vcmp.lt.s32.totalorder %v1942_v0, 0 }
 0x11a   :  { %v1468_v31 = vadd.s32 4294967294, %v657_v51  ;;  %v739_v58 = vsel %vm727_vm13, %v721_v2, %v738_v57  ;;  %v87_v28 = vsel %vm84_vm4, %v82_v17, %v1686_v25  ;;  %v2175_v63 = vadd.f32 %v1702_v36, %v128_v22 }
 0x11b   :  { %v740_v60 = vsel %vm726_vm7, %v737_v13, %v739_v58  ;;  %v732_v3 = vsel %vm726_vm7, %v729_v14, %v731_v49  ;;  %vm580_vm5 = vcmp.lt.s32.totalorder %v2145_v61, 2  ;;  %vm2183_vm12 = vcmp.le.f32.partialorder %v589_v16, 0.7853982 }
 0x11c   :  { %vm1469_vm14 = vcmp.lt.s32.totalorder %v1468_v31, 0  ;;  %v2177_v42 = vmul.u32.u64.low %v741_v38, %v740_v60  ;;  %v2178_v39 = vmul.u32.u64.high %v741_v38, %v740_v60, %v2177_v42  ;;  %v645_v2 = vadd.s32 %v2090_v44, %v2095_v53 }
 0x11d   :  { %v660_v5 = vsel %vm1469_vm14, 0, %v1468_v31  ;;  %vm577_vm6 = vweird.f32 %v1827_v11  ;;  %v676_v62 = vsel %vm591_vm10, %v675_v12, %v2128_v1  ;;  %v751_v29 = vadd.s32 1, %v2168_v15 }
 0x11e   :  { %v661_v17 = vsub.s32 32, %v660_v5  ;;  %v665_v18 = vsub.s32 4294967266, %v660_v5  ;;  %v748_v56 = vmul.u32 %v741_v38, %v732_v3  ;;  %v129_v16 = vmul.f32 %v1699_v34, %v87_v28 }
 0x11f   :  { %v797_v6 = vand.u32 2147483647, %v2175_v63  ;;  %v800_v22 = vand.u32 2139095040, %v2175_v63  ;;  %v662_v44 = vshll.u32 %v2143_v24, %v660_v5  ;;  %vm750_vm15 = vc.u32 %v2178_v39, %v2167_v45 }
 0x120   :  { %v663_v53 = vshrl.u32 %v645_v2, %v661_v17  ;;  %v666_v8 = vadd.s32 127, %v665_v18  ;;  %vm584_vm9 = vcmp.eq.s32.totalorder %v2145_v61, 2  ;;  %v678_v1 = vsel %vm2183_vm12, 0, %v676_v62 }
 0x121   :  { %v1577_v7 = vpop.eup %1576  ;;  %v752_v38 = vsel %vm750_vm15, %v751_v29, %v2168_v15  ;;  %v801_v46 = vshrl.u32 %v800_v22, 23  ;;  %v2205_v12 = vadd.f32 %v1704_v37, %v129_v16  ;;  %v804_v43 = vand.u32 8388607, %v797_v6 }
 0x122   :  { %v1579_v54 = vpop.eup %1578  ;;  %v585_v20 = vxor.u32 2147483648, %v1577_v7  ;;  %v664_v55 = vor.u32 %v663_v53, %v662_v44  ;;  %v667_v47 = vshll.u32 %v666_v8, 23  ;;  %v753_v19 = vadd.s32 %v752_v38, %v748_v56 }
 0x123   :  { %v582_v24 = vxor.u32 2147483648, %v1579_v54  ;;  %v1474_v4 = vadd.s32 4294967169, %v801_v46  ;;  %vm581_vm11 = vcmp.eq.s32.totalorder %v2145_v61, 0  ;;  %v682_v52 = vadd.s32 3, %v678_v1 }
 0x124   :  { %v586_v51 = vsel %vm584_vm9, %v585_v20, %v1579_v54  ;;  %v668_v13 = vor.u32 4788187, %v667_v47  ;;  %v754_v14 = vadd.s32 536870912, %v753_v19  ;;  %v92_v57 = vsel %vm2679_vm3, %v1686_v25, %v2116_v9 }
 0x125   :  { %v583_v49 = vsel %vm581_vm11, %v1577_v7, %v582_v24  ;;  %v807_v31 = vadd.s32 1, %v1474_v4  ;;  %v671_v60 = vcvt.s32.f32 %v664_v55  ;;  %v805_v42 = vor.u32 8388608, %v804_v43 }
 0x126   :  { %v587_v58 = vsel %vm580_vm5, %v583_v49, %v586_v51  ;;  %v669_v15 = vand.u32 2147483647, %v668_v13  ;;  %v755_v28 = vshrl.u32 %v754_v14, 30  ;;  %v904_v2 = vand.u32 2139095040, %v2205_v12 }
 0x127   :  { %v588_v3 = vsel %vm577_vm6, nan, %v587_v58  ;;  %vm808_vm13 = vcmp.gt.s32.totalorder %v807_v31, 0  ;;  %v2218_v62 = vand.u32 3, %v682_v52  ;;  %vm695_vm7 = vcmp.lt.s32.totalorder %v1949_v59, 0 }
 0x128   :  { %v672_v5 = vmul.f32 %v671_v60, %v669_v15  ;;  %v756_v17 = vshll.u32 %v755_v28, 30  ;;  %1425 = vst [vmem:[#allocation2 + $0x18] sm:$0xff] %v588_v3  ;;  %v809_v18 = vsel %vm808_vm13, %v807_v31, 0  ;;  %v749_v61 = vadd.s32 %v2167_v45, %v2178_v39 }
 0x129   :  { %v811_v25 = vand.u32 31, %v809_v18  ;;  %v2226_v11 = vmul.f32 %v1697_v33, %v92_v57  ;;  %v2228_v16 = vshll.u32 %v805_v42, 8  ;;  %v901_v22 = vand.u32 2147483647, %v2205_v12 }
 0x12a   :  { %v673_v9 = vxor.u32 2147483648, %v672_v5  ;;  %v2223_v29 = vsub.s32 %v753_v19, %v756_v17  ;;  %v905_v44 = vshrl.u32 %v904_v2, 23  ;;  %v779_v7 = vsub.s32 4, %v755_v28 }
 0x12b   :  { %v812_v56 = vsub.s32 32, %v811_v25  ;;  %v810_v1 = vshrl.u32 %v809_v18, 5  ;;  %v814_v39 = vshll.u32 %v1639_v21, %v811_v25  ;;  %v817_v20 = vshll.u32 %v1640_v27, %v811_v25 }
 0x12c   :  { %v674_v53 = vsel %vm591_vm10, %v673_v9, %v672_v5  ;;  %v759_v8 = vsub.s32 0, %v2223_v29  ;;  %v820_v19 = vshll.u32 %v1641_v30, %v811_v25  ;;  %v1478_v24 = vadd.s32 4294967169, %v905_v44 }
 0x12d   :  { %v677_v45 = vsel %vm2183_vm12, %v1942_v0, %v674_v53  ;;  %v815_v38 = vshrl.u32 %v1640_v27, %v812_v56  ;;  %v818_v46 = vshrl.u32 %v1641_v30, %v812_v56  ;;  %v821_v55 = vshrl.u32 %v1642_v35, %v812_v56 }
 0x12e   :  { %1580 = vcosq.f32 %v677_v45  ;;  %v1471_v54 = vmin.u32 %v759_v8, %v2223_v29  ;;  %v813_v4 = vshrl.u32 %v1639_v21, %v812_v56  ;;  %v823_v51 = vshll.u32 %v1642_v35, %v811_v25 }
 0x12f   :  { %1582 = vsinq.f32 %v677_v45  ;;  %v816_v47 = vor.u32 %v815_v38, %v814_v39  ;;  %v819_v43 = vor.u32 %v818_v46, %v817_v20  ;;  %v822_v13 = vor.u32 %v821_v55, %v820_v19 }
 0x130   :  { %v761_v50 = vclz %v1471_v54  ;;  %v824_v14 = vshrl.u32 %v1643_v41, %v812_v56  ;;  %v826_v49 = vshll.u32 %v1643_v41, %v811_v25  ;;  %v827_v52 = vshrl.u32 %v1644_v48, %v812_v56 }
 0x131   :  { %vm688_vm10 = vcmp.eq.s32.totalorder %v2218_v62, 2  ;;  %v2252_v31 = vsel %vm695_vm7, %v779_v7, %v755_v28  ;;  %vm829_vm14 = vcmp.lt.s32.totalorder %v810_v1, 1  ;;  %vm831_vm5 = vcmp.lt.s32.totalorder %v810_v1, 3 }
 0x132   :  { %v1472_v57 = vadd.s32 4294967294, %v761_v50  ;;  %vm685_vm12 = vcmp.eq.s32.totalorder %v2218_v62, 0  ;;  %v825_v58 = vor.u32 %v824_v14, %v823_v51  ;;  %v828_v15 = vor.u32 %v827_v52, %v826_v49 }
 0x133   :  { %vm832_vm6 = vcmp.lt.s32.totalorder %v810_v1, 4  ;;  %v833_v60 = vsel %vm829_vm14, %v813_v4, %v816_v47  ;;  %vm684_vm15 = vcmp.lt.s32.totalorder %v2218_v62, 2  ;;  %vm2258_vm9 = vcmp.le.f32.partialorder %v693_v23, 0.7853982 }
 0x134   :  { %vm1473_vm11 = vcmp.lt.s32.totalorder %v1472_v57, 0  ;;  %v834_v42 = vsel %vm832_vm6, %v822_v13, 2102212464  ;;  %v837_v28 = vsel %vm829_vm14, %v816_v47, %v819_v43  ;;  %v841_v2 = vsel %vm829_vm14, %v819_v43, %v822_v13 }
 0x135   :  { %vm681_vm13 = vweird.f32 %v1942_v0  ;;  %v764_v5 = vsel %vm1473_vm11, 0, %v1472_v57  ;;  %v835_v17 = vsel %vm831_vm5, %v819_v43, %v834_v42  ;;  %v838_v18 = vsel %vm832_vm6, %v825_v58, 920167782 }
 0x136   :  { %v842_v25 = vsel %vm832_vm6, %v828_v15, 1326507024  ;;  %v765_v9 = vsub.s32 32, %v764_v5  ;;  %v766_v56 = vshll.u32 %v2223_v29, %v764_v5  ;;  %v769_v44 = vsub.s32 4294967266, %v764_v5 }
 0x137   :  { %vm830_vm3 = vcmp.lt.s32.totalorder %v810_v1, 2  ;;  %v839_v53 = vsel %vm831_vm5, %v822_v13, %v838_v18  ;;  %v843_v8 = vsel %vm831_vm5, %v825_v58, %v842_v25  ;;  %v911_v7 = vadd.s32 1, %v1478_v24 }
 0x138   :  { %v836_v23 = vsel %vm830_vm3, %v833_v60, %v835_v17  ;;  %v1581_v45 = vpop.eup %1580  ;;  %v767_v39 = vshrl.u32 %v749_v61, %v765_v9  ;;  %v770_v38 = vadd.s32 127, %v769_v44  ;;  %v840_v46 = vsel %vm830_vm3, %v837_v28, %v839_v53 }
 0x139   :  { %v844_v54 = vsel %vm830_vm3, %v841_v2, %v843_v8  ;;  %v1583_v20 = vpop.eup %1582  ;;  %v689_v55 = vxor.u32 2147483648, %v1581_v45  ;;  %vm912_vm14 = vcmp.gt.s32.totalorder %v911_v7, 0  ;;  %v2275_v61 = vadd.f32 %v1708_v40, %v2226_v11 }
 0x13a   :  { %v2268_v47 = vmul.u32.u64.low %v2228_v16, %v844_v54  ;;  %v2269_v19 = vmul.u32.u64.high %v2228_v16, %v844_v54, %v2268_v47  ;;  %v686_v29 = vxor.u32 2147483648, %v1583_v20  ;;  %v768_v50 = vor.u32 %v767_v39, %v766_v56 }
 0x13b   :  { %v771_v4 = vshll.u32 %v770_v38, 23  ;;  %v913_v43 = vsel %vm912_vm14, %v911_v7, 0  ;;  %v690_v1 = vsel %vm688_vm10, %v689_v55, %v1583_v20  ;;  %v908_v49 = vand.u32 8388607, %v901_v22 }
 0x13c   :  { %v2278_v24 = vmul.u32.u64.low %v2228_v16, %v840_v46  ;;  %v2279_v51 = vmul.u32.u64.high %v2228_v16, %v840_v46, %v2278_v24  ;;  %v687_v13 = vsel %vm685_vm12, %v1581_v45, %v686_v29  ;;  %v915_v52 = vand.u32 31, %v913_v43 }
 0x13d   :  { %v772_v14 = vor.u32 4788187, %v771_v4  ;;  %v691_v57 = vsel %vm684_vm15, %v687_v13, %v690_v1  ;;  %v775_v58 = vcvt.s32.f32 %v768_v50  ;;  %v782_v11 = vsel %vm2258_vm9, 0, %v2252_v31 }
 0x13e   :  { %v852_v15 = vmul.u32 %v2228_v16, %v836_v23  ;;  %v692_v60 = vsel %vm681_vm13, nan, %v691_v57  ;;  %vm854_vm3 = vc.u32 %v2269_v19, %v2278_v24  ;;  %v916_v28 = vsub.s32 32, %v915_v52 }
 0x13f   :  { %v773_v42 = vand.u32 2147483647, %v772_v14  ;;  %1426 = vst [vmem:[#allocation2 + $0x20] sm:$0xff] %v692_v60  ;;  %v855_v2 = vadd.s32 1, %v2279_v51  ;;  %v2297_v62 = vshrl.u32 %v913_v43, 5  ;;  %v918_v5 = vshll.u32 %v1639_v21, %v915_v52 }
 0x140   :  { %v921_v17 = vshll.u32 %v1640_v27, %v915_v52  ;;  %v919_v16 = vshrl.u32 %v1640_v27, %v916_v28  ;;  %v922_v0 = vshrl.u32 %v1641_v30, %v916_v28  ;;  %v924_v18 = vshll.u32 %v1641_v30, %v915_v52 }
 0x141   :  { %v776_v31 = vmul.f32 %v775_v58, %v773_v42  ;;  %v856_v25 = vsel %vm854_vm3, %v855_v2, %v2279_v51  ;;  %v925_v9 = vshrl.u32 %v1642_v35, %v916_v28  ;;  %v927_v56 = vshll.u32 %v1642_v35, %v915_v52 }
 0x142   :  { %v928_v44 = vshrl.u32 %v1643_v41, %v916_v28  ;;  %v857_v53 = vadd.s32 %v856_v25, %v852_v15  ;;  %v920_v8 = vor.u32 %v919_v16, %v918_v5  ;;  %v923_v7 = vor.u32 %v922_v0, %v921_v17  ;;  %v2339_v17 = vpop.permute.xlu1 %66 }
 0x143   :  { %v777_v23 = vxor.u32 2147483648, %v776_v31  ;;  %v926_v45 = vor.u32 %v925_v9, %v924_v18  ;;  %v930_v38 = vshll.u32 %v1643_v41, %v915_v52  ;;  %v931_v46 = vshrl.u32 %v1644_v48, %v916_v28 }
 0x144   :  { %v929_v39 = vor.u32 %v928_v44, %v927_v56  ;;  %v786_v20 = vadd.s32 3, %v782_v11  ;;  %v858_v55 = vadd.s32 536870912, %v857_v53  ;;  %v909_v47 = vor.u32 8388608, %v908_v49 }
 0x145   :  { %v778_v54 = vsel %vm695_vm7, %v777_v23, %v776_v31  ;;  %v917_v50 = vshrl.u32 %v1639_v21, %v916_v28  ;;  %v932_v4 = vor.u32 %v931_v46, %v930_v38  ;;  %vm933_vm10 = vcmp.lt.s32.totalorder %v2297_v62, 1 }
 0x146   :  { %v781_v29 = vsel %vm2258_vm9, %v1949_v59, %v778_v54  ;;  %v859_v43 = vshrl.u32 %v858_v55, 30  ;;  %vm936_vm5 = vcmp.lt.s32.totalorder %v2297_v62, 4  ;;  %v941_v1 = vsel %vm933_vm10, %v920_v8, %v923_v7 }
 0x147   :  { %1584 = vcosq.f32 %v781_v29  ;;  %vm935_vm7 = vcmp.lt.s32.totalorder %v2297_v62, 3  ;;  %v942_v51 = vsel %vm936_vm5, %v929_v39, 920167782  ;;  %v945_v3 = vsel %vm933_vm10, %v923_v7, %v926_v45 }
 0x148   :  { %1586 = vsinq.f32 %v781_v29  ;;  %v860_v13 = vshll.u32 %v859_v43, 30  ;;  %vm934_vm12 = vcmp.lt.s32.totalorder %v2297_v62, 2  ;;  %v943_v14 = vsel %vm935_vm7, %v926_v45, %v942_v51 }
 0x149   :  { %v946_v49 = vsel %vm936_vm5, %v932_v4, 1326507024  ;;  %v938_v52 = vsel %vm936_vm5, %v926_v45, 2102212464  ;;  %v944_v57 = vsel %vm934_vm12, %v941_v1, %v943_v14  ;;  %v949_v11 = vshll.u32 %v909_v47, 8 }
 0x14a   :  { %v947_v58 = vsel %vm935_vm7, %v929_v39, %v946_v49  ;;  %v2330_v15 = vsub.s32 %v857_v53, %v860_v13  ;;  %v787_v42 = vand.u32 3, %v786_v20  ;;  %v937_v28 = vsel %vm933_vm10, %v917_v50, %v920_v8 }
 0x14b   :  { %v948_v60 = vsel %vm934_vm12, %v945_v3, %v947_v58  ;;  %v939_v16 = vsel %vm935_vm7, %v923_v7, %v938_v52  ;;  %v2344_v0 = vmul.u32.u64.low %v949_v11, %v944_v57  ;;  %v2345_v18 = vmul.u32.u64.high %v949_v11, %v944_v57, %v2344_v0 }
 0x14c   :  { %v2336_v2 = vmul.u32.u64.low %v949_v11, %v948_v60  ;;  %v2337_v5 = vmul.u32.u64.high %v949_v11, %v948_v60, %v2336_v2  ;;  %v863_v31 = vsub.s32 0, %v2330_v15  ;;  %v73_v25 = vsel %vm69_vm0, %v1677_v10, %v1688_v26 }
 0x14d   :  { %vm785_vm6 = vweird.f32 %v1949_v59  ;;  %v1008_v9 = vand.u32 2139095040, %v2275_v61  ;;  %vm799_vm15 = vcmp.lt.s32.totalorder %v2175_v63, 0  ;;  %v883_v44 = vsub.s32 4, %v859_v43 }
 0x14e   :  { %v1475_v56 = vmin.u32 %v863_v31, %v2330_v15  ;;  %v78_v23 = vsel %vm74_vm1, %v73_v25, %v2339_v17  ;;  %vm2358_vm9 = vcmp.le.f32.partialorder %v797_v6, 0.7853982  ;;  %v940_v8 = vsel %vm934_vm12, %v937_v28, %v939_v16 }
 0x14f   :  { %v1005_v7 = vand.u32 2147483647, %v2275_v61  ;;  %v1009_v45 = vshrl.u32 %v1008_v9, 23  ;;  %vm788_vm0 = vcmp.lt.s32.totalorder %v787_v42, 2  ;;  %vm789_vm11 = vcmp.eq.s32.totalorder %v787_v42, 0 }
 0x150   :  { %v865_v38 = vclz %v1475_v56  ;;  %vm958_vm13 = vc.u32 %v2337_v5, %v2344_v0  ;;  %vm792_vm1 = vcmp.eq.s32.totalorder %v787_v42, 2  ;;  %v959_v6 = vadd.s32 1, %v2345_v18 }
 0x151   :  { %v1585_v39 = vpop.eup %1584  ;;  %v1482_v20 = vadd.s32 4294967169, %v1009_v45  ;;  %v884_v62 = vsel %vm799_vm15, %v883_v44, %v859_v43  ;;  %v956_v29 = vmul.u32 %v949_v11, %v940_v8  ;;  %v1012_v1 = vand.u32 8388607, %v1005_v7 }
 0x152   :  { %v1587_v46 = vpop.eup %1586  ;;  %v793_v54 = vxor.u32 2147483648, %v1585_v39  ;;  %v1476_v47 = vadd.s32 4294967294, %v865_v38  ;;  %v960_v4 = vsel %vm958_vm13, %v959_v6, %v2345_v18  ;;  %v853_v13 = vadd.s32 %v2278_v24, %v2269_v19 }
 0x153   :  { %v790_v55 = vxor.u32 2147483648, %v1587_v46  ;;  %v1015_v51 = vadd.s32 1, %v1482_v20  ;;  %v961_v14 = vadd.s32 %v960_v4, %v956_v29  ;;  %v886_v43 = vsel %vm2358_vm9, 0, %v884_v62 }
 0x154   :  { %v794_v50 = vsel %vm792_vm1, %v793_v54, %v1587_v46  ;;  %vm1477_vm14 = vcmp.lt.s32.totalorder %v1476_v47, 0  ;;  %v83_v60 = vsel %vm79_vm2, %v2339_v17, %v1677_v10  ;;  %v1013_v24 = vor.u32 8388608, %v1012_v1 }
 0x155   :  { %v791_v3 = vsel %vm789_vm11, %v1585_v39, %v790_v55  ;;  %v868_v52 = vsel %vm1477_vm14, 0, %v1476_v47  ;;  %vm1016_vm3 = vcmp.gt.s32.totalorder %v1015_v51, 0  ;;  %v962_v19 = vadd.s32 536870912, %v961_v14 }
 0x156   :  { %v795_v49 = vsel %vm788_vm0, %v791_v3, %v794_v50  ;;  %v869_v58 = vsub.s32 32, %v868_v52  ;;  %v873_v11 = vsub.s32 4294967266, %v868_v52  ;;  %v1017_v42 = vsel %vm1016_vm3, %v1015_v51, 0 }
 0x157   :  { %v796_v57 = vsel %vm785_vm6, nan, %v795_v49  ;;  %v131_v28 = vmul.f32 %v1695_v32, %v78_v23  ;;  %v870_v2 = vshll.u32 %v2330_v15, %v868_v52  ;;  %v1019_v18 = vand.u32 31, %v1017_v42 }
 0x158   :  { %1427 = vst.msk [vmem:[#allocation2 + $0x28] sm:$0xff] %vm1423_vm8, %v796_v57  ;;  %v871_v31 = vshrl.u32 %v853_v13, %v869_v58  ;;  %v874_v16 = vadd.s32 127, %v873_v11  ;;  %v2386_v59 = vshrl.u32 %v962_v19, 30  ;;  %v2388_v44 = vadd.s32 3, %v886_v43 }
 0x159   :  { %v1020_v56 = vsub.s32 32, %v1019_v18  ;;  %v2391_v10 = vadd.s32 %v2344_v0, %v2337_v5  ;;  %v88_v32 = vsel %vm84_vm4, %v83_v60, %v1688_v26  ;;  %v2397_v45 = vshll.u32 %v1013_v24, 8 }
 0x15a   :  { %v872_v25 = vor.u32 %v871_v31, %v870_v2  ;;  %v875_v9 = vshll.u32 %v874_v16, 23  ;;  %v964_v8 = vshll.u32 %v2386_v59, 30  ;;  %v2400_v39 = vadd.f32 %v1702_v36, %v131_v28 }
 0x15b   :  { %v1023_v15 = vshrl.u32 %v1640_v27, %v1020_v56  ;;  %v1018_v46 = vshrl.u32 %v1017_v42, 5  ;;  %v1022_v54 = vshll.u32 %v1639_v21, %v1019_v18  ;;  %v1026_v5 = vshrl.u32 %v1641_v30, %v1020_v56 }
 0x15c   :  { %v876_v23 = vor.u32 4788187, %v875_v9  ;;  %v2402_v38 = vsub.s32 %v961_v14, %v964_v8  ;;  %v879_v6 = vcvt.s32.f32 %v872_v25  ;;  %v1025_v20 = vshll.u32 %v1640_v27, %v1019_v18 }
 0x15d   :  { %v1029_v55 = vshrl.u32 %v1642_v35, %v1020_v56  ;;  %v1024_v62 = vor.u32 %v1023_v15, %v1022_v54  ;;  %v1028_v29 = vshll.u32 %v1641_v30, %v1019_v18  ;;  %v1031_v36 = vshll.u32 %v1642_v35, %v1019_v18 }
 0x15e   :  { %v877_v0 = vand.u32 2147483647, %v876_v23  ;;  %v967_v47 = vsub.s32 0, %v2402_v38  ;;  %v1027_v4 = vor.u32 %v1026_v5, %v1025_v20  ;;  %v1032_v1 = vshrl.u32 %v1643_v41, %v1020_v56 }
 0x15f   :  { %v1035_v51 = vshrl.u32 %v1644_v48, %v1020_v56  ;;  %vm903_vm2 = vcmp.lt.s32.totalorder %v2205_v12, 0  ;;  %v987_v13 = vsub.s32 4, %v2386_v59  ;;  %v132_v14 = vmul.f32 %v1699_v34, %v88_v32 }
 0x160   :  { %v880_v50 = vmul.f32 %v879_v6, %v877_v0  ;;  %v1479_v3 = vmin.u32 %v967_v47, %v2402_v38  ;;  %v1112_v49 = vand.u32 2139095040, %v2400_v39  ;;  %v1030_v43 = vor.u32 %v1029_v55, %v1028_v29 }
 0x161   :  { %v1033_v57 = vor.u32 %v1032_v1, %v1031_v36  ;;  %v1034_v58 = vshll.u32 %v1643_v41, %v1019_v18  ;;  %v1021_v60 = vshrl.u32 %v1639_v21, %v1020_v56  ;;  %vm1037_vm4 = vcmp.lt.s32.totalorder %v1018_v46, 1 }
 0x162   :  { %v881_v52 = vxor.u32 2147483648, %v880_v50  ;;  %v969_v11 = vclz %v1479_v3  ;;  %vm1038_vm10 = vcmp.lt.s32.totalorder %v1018_v46, 2  ;;  %vm1040_vm5 = vcmp.lt.s32.totalorder %v1018_v46, 4 }
 0x163   :  { %v1036_v24 = vor.u32 %v1035_v51, %v1034_v58  ;;  %v1045_v42 = vsel %vm1037_vm4, %v1024_v62, %v1027_v4  ;;  %vm1039_vm7 = vcmp.lt.s32.totalorder %v1018_v46, 3  ;;  %v1046_v2 = vsel %vm1040_vm5, %v1033_v57, 920167782 }
 0x164   :  { %v882_v19 = vsel %vm799_vm15, %v881_v52, %v880_v50  ;;  %v1480_v28 = vadd.s32 4294967294, %v969_v11  ;;  %v1041_v31 = vsel %vm1037_vm4, %v1021_v60, %v1024_v62  ;;  %v1042_v16 = vsel %vm1040_vm5, %v1030_v43, 2102212464 }
 0x165   :  { %v885_v34 = vsel %vm2358_vm9, %v2175_v63, %v882_v19  ;;  %v1047_v18 = vsel %vm1039_vm7, %v1030_v43, %v1046_v2  ;;  %v1049_v9 = vsel %vm1037_vm4, %v1027_v4, %v1030_v43  ;;  %v1050_v8 = vsel %vm1040_vm5, %v1036_v24, 1326507024 }
 0x166   :  { %1588 = vcosq.f32 %v885_v34  ;;  %vm1481_vm12 = vcmp.lt.s32.totalorder %v1480_v28, 0  ;;  %v1048_v25 = vsel %vm1038_vm10, %v1045_v42, %v1047_v18  ;;  %v1043_v54 = vsel %vm1039_vm7, %v1027_v4, %v1042_v16 }
 0x167   :  { %1590 = vsinq.f32 %v885_v34  ;;  %v972_v56 = vsel %vm1481_vm12, 0, %v1480_v28  ;;  %v2431_v53 = vmul.u32.u64.low %v2397_v45, %v1048_v25  ;;  %v2432_v32 = vmul.u32.u64.high %v2397_v45, %v1048_v25, %v2431_v53 }
 0x168   :  { %v973_v23 = vsub.s32 32, %v972_v56  ;;  %v977_v15 = vsub.s32 4294967266, %v972_v56  ;;  %v1051_v5 = vsel %vm1039_vm7, %v1033_v57, %v1050_v8  ;;  %v974_v0 = vshll.u32 %v2402_v38, %v972_v56 }
 0x169   :  { %v988_v6 = vsel %vm903_vm2, %v987_v13, %v2386_v59  ;;  %v1052_v20 = vsel %vm1038_vm10, %v1049_v9, %v1051_v5  ;;  %v1113_v55 = vshrl.u32 %v1112_v49, 23  ;;  %vm2449_vm6 = vcmp.le.f32.partialorder %v901_v22, 0.7853982 }
 0x16a   :  { %v975_v47 = vshrl.u32 %v2391_v10, %v973_v23  ;;  %v978_v62 = vadd.s32 127, %v977_v15  ;;  %v2444_v29 = vmul.u32.u64.low %v2397_v45, %v1052_v20  ;;  %v2445_v36 = vmul.u32.u64.high %v2397_v45, %v1052_v20, %v2444_v29 }
 0x16b   :  { %v1044_v38 = vsel %vm1038_vm10, %v1041_v31, %v1043_v54  ;;  %v1063_v59 = vadd.s32 1, %v2432_v32  ;;  %v1486_v4 = vadd.s32 4294967169, %v1113_v55  ;;  %v990_v10 = vsel %vm2449_vm6, 0, %v988_v6 }
 0x16c   :  { %v976_v1 = vor.u32 %v975_v47, %v974_v0  ;;  %v979_v51 = vshll.u32 %v978_v62, 23  ;;  %vm889_vm15 = vweird.f32 %v2175_v63  ;;  %v891_v3 = vand.u32 3, %v2388_v44 }
 0x16d   :  { %vm2696_vm9 = vcmask 359424   ;;  %v1119_v13 = vadd.s32 1, %v1486_v4  ;;  %v1060_v46 = vmul.u32 %v2397_v45, %v1044_v38  ;;  %vm1062_vm0 = vc.u32 %v2445_v36, %v2431_v53 }
 0x16e   :  { %v93_v22 = vsel %vm2696_vm9, %v1688_v26, %v2339_v17  ;;  %v980_v49 = vor.u32 4788187, %v979_v51  ;;  %v2466_v52 = vadd.f32 %v1704_v37, %v132_v14  ;;  %v983_v57 = vcvt.s32.f32 %v976_v1 }
 0x16f   :  { %v994_v58 = vadd.s32 3, %v990_v10  ;;  %v1064_v11 = vsel %vm1062_vm0, %v1063_v59, %v2432_v32  ;;  %vm1120_vm11 = vcmp.gt.s32.totalorder %v1119_v13, 0  ;;  %vm896_vm13 = vcmp.eq.s32.totalorder %v891_v3, 2 }
 0x170   :  { %v1589_v43 = vpop.eup %1588  ;;  %v981_v19 = vand.u32 2147483647, %v980_v49  ;;  %v1065_v26 = vadd.s32 %v1064_v11, %v1060_v46  ;;  %v1121_v17 = vsel %vm1120_vm11, %v1119_v13, 0  ;;  %v1109_v45 = vand.u32 2147483647, %v2400_v39 }
 0x171   :  { %v1591_v44 = vpop.eup %1590  ;;  %v897_v60 = vxor.u32 2147483648, %v1589_v43  ;;  %v1123_v42 = vand.u32 31, %v1121_v17  ;;  %vm893_vm1 = vcmp.eq.s32.totalorder %v891_v3, 0  ;;  %vm892_vm14 = vcmp.lt.s32.totalorder %v891_v3, 2 }
 0x172   :  { %v894_v24 = vxor.u32 2147483648, %v1591_v44  ;;  %v984_v37 = vmul.f32 %v983_v57, %v981_v19  ;;  %v1066_v14 = vadd.s32 536870912, %v1065_v26  ;;  %v1216_v31 = vand.u32 2139095040, %v2466_v52 }
 0x173   :  { %v898_v34 = vsel %vm896_vm13, %v897_v60, %v1591_v44  ;;  %v1124_v2 = vsub.s32 32, %v1123_v42  ;;  %v2471_v25 = vand.u32 3, %v994_v58  ;;  %v1116_v8 = vand.u32 8388607, %v1109_v45 }
 0x174   :  { %v895_v28 = vsel %vm893_vm1, %v1589_v43, %v894_v24  ;;  %v985_v18 = vxor.u32 2147483648, %v984_v37  ;;  %v2473_v9 = vshrl.u32 %v1066_v14, 30  ;;  %v1126_v5 = vshll.u32 %v1639_v21, %v1123_v42 }
 0x175   :  { %v899_v16 = vsel %vm892_vm14, %v895_v28, %v898_v34  ;;  %v1127_v32 = vshrl.u32 %v1640_v27, %v1124_v2  ;;  %v1130_v23 = vshrl.u32 %v1641_v30, %v1124_v2  ;;  %v1133_v0 = vshrl.u32 %v1642_v35, %v1124_v2 }
 0x176   :  { %v900_v56 = vsel %vm889_vm15, nan, %v899_v16  ;;  %v986_v15 = vsel %vm903_vm2, %v985_v18, %v984_v37  ;;  %v1068_v54 = vshll.u32 %v2473_v9, 30  ;;  %v1122_v6 = vshrl.u32 %v1121_v17, 5 }
 0x177   :  { %1428 = vst [vmem:[#allocation2 + $0x30] sm:$0xff] %v900_v56  ;;  %v989_v63 = vsel %vm2449_vm6, %v2205_v12, %v986_v15  ;;  %v1129_v20 = vshll.u32 %v1640_v27, %v1123_v42  ;;  %v1217_v55 = vshrl.u32 %v1216_v31, 23  ;;  %v1128_v62 = vor.u32 %v1127_v32, %v1126_v5 }
 0x178   :  { %1592 = vcosq.f32 %v989_v63  ;;  %v2490_v47 = vsub.s32 %v1065_v26, %v1068_v54  ;;  %v1132_v29 = vshll.u32 %v1641_v30, %v1123_v42  ;;  %v1135_v59 = vshll.u32 %v1642_v35, %v1123_v42 }
 0x179   :  { %1594 = vsinq.f32 %v989_v63  ;;  %v1131_v38 = vor.u32 %v1130_v23, %v1129_v20  ;;  %v1136_v4 = vshrl.u32 %v1643_v41, %v1124_v2  ;;  %v1138_v51 = vshll.u32 %v1643_v41, %v1123_v42 }
 0x17a   :  { %v1071_v1 = vsub.s32 0, %v2490_v47  ;;  %v1134_v50 = vor.u32 %v1133_v0, %v1132_v29  ;;  %v1139_v10 = vshrl.u32 %v1644_v48, %v1124_v2  ;;  %v2499_v3 = vmul.f32 %v1697_v33, %v93_v22 }
 0x17b   :  { %v1117_v13 = vor.u32 8388608, %v1116_v8  ;;  %v1137_v49 = vor.u32 %v1136_v4, %v1135_v59  ;;  %vm1000_vm3 = vcmp.eq.s32.totalorder %v2471_v25, 2  ;;  %vm1141_vm2 = vcmp.lt.s32.totalorder %v1122_v6, 1 }
 0x17c   :  { %v1483_v46 = vmin.u32 %v1071_v1, %v2490_v47  ;;  %v1140_v43 = vor.u32 %v1139_v10, %v1138_v51  ;;  %vm1144_vm4 = vcmp.lt.s32.totalorder %v1122_v6, 4  ;;  %vm997_vm10 = vcmp.eq.s32.totalorder %v2471_v25, 0 }
 0x17d   :  { %v1125_v57 = vshrl.u32 %v1639_v21, %v1124_v2  ;;  %v1149_v58 = vsel %vm1141_vm2, %v1128_v62, %v1131_v38  ;;  %v1150_v11 = vsel %vm1144_vm4, %v1137_v49, 920167782  ;;  %v1490_v44 = vadd.s32 4294967169, %v1217_v55 }
 0x17e   :  { %vm996_vm5 = vcmp.lt.s32.totalorder %v2471_v25, 2  ;;  %v1073_v33 = vclz %v1483_v46  ;;  %vm1143_vm7 = vcmp.lt.s32.totalorder %v1122_v6, 3  ;;  %v1146_v22 = vsel %vm1144_vm4, %v1134_v50, 2102212464 }
 0x17f   :  { %v1153_v60 = vsel %vm1141_vm2, %v1131_v38, %v1134_v50  ;;  %vm993_vm12 = vweird.f32 %v2205_v12  ;;  %vm1142_vm6 = vcmp.lt.s32.totalorder %v1122_v6, 2  ;;  %v1151_v19 = vsel %vm1143_vm7, %v1134_v50, %v1150_v11 }
 0x180   :  { %v1154_v26 = vsel %vm1144_vm4, %v1140_v43, 1326507024  ;;  %v1157_v17 = vshll.u32 %v1117_v13, 8  ;;  %vm1007_vm15 = vcmp.lt.s32.totalorder %v2275_v61, 0  ;;  %v1484_v24 = vadd.s32 4294967294, %v1073_v33 }
 0x181   :  { %v1145_v42 = vsel %vm1141_vm2, %v1125_v57, %v1128_v62  ;;  %v1152_v34 = vsel %vm1142_vm6, %v1149_v58, %v1151_v19  ;;  %v1155_v37 = vsel %vm1143_vm7, %v1137_v49, %v1154_v26  ;;  %v1147_v14 = vsel %vm1143_vm7, %v1131_v38, %v1146_v22 }
 0x182   :  { %v1156_v28 = vsel %vm1142_vm6, %v1153_v60, %v1155_v37  ;;  %v2513_v2 = vmul.u32.u64.low %v1157_v17, %v1152_v34  ;;  %v2514_v31 = vmul.u32.u64.high %v1157_v17, %v1152_v34, %v2513_v2  ;;  %v1593_v16 = vpop.eup %1592  ;;  %vm1485_vm9 = vcmp.lt.s32.totalorder %v1484_v24, 0 }
 0x183   :  { %v2517_v18 = vmul.u32.u64.low %v1157_v17, %v1156_v28  ;;  %v2518_v56 = vmul.u32.u64.high %v1157_v17, %v1156_v28, %v2517_v18  ;;  %v1223_v8 = vadd.s32 1, %v1490_v44  ;;  %v1595_v32 = vpop.eup %1594  ;;  %v1001_v23 = vxor.u32 2147483648, %v1593_v16 }
 0x184   :  { %v1061_v15 = vadd.s32 %v2431_v53, %v2445_v36  ;;  %v1076_v54 = vsel %vm1485_vm9, 0, %v1484_v24  ;;  %v1213_v5 = vand.u32 2147483647, %v2466_v52  ;;  %v998_v0 = vxor.u32 2147483648, %v1595_v32 }
 0x185   :  { %v1077_v63 = vsub.s32 32, %v1076_v54  ;;  %v1081_v20 = vsub.s32 4294967266, %v1076_v54  ;;  %v1148_v55 = vsel %vm1142_vm6, %v1145_v42, %v1147_v14  ;;  %v1002_v62 = vsel %vm1000_vm3, %v1001_v23, %v1595_v32 }
 0x186   :  { %v1091_v29 = vsub.s32 4, %v2473_v9  ;;  %v1167_v38 = vadd.s32 1, %v2514_v31  ;;  %vm1224_vm0 = vcmp.gt.s32.totalorder %v1223_v8, 0  ;;  %v999_v59 = vsel %vm997_vm10, %v1593_v16, %v998_v0 }
 0x187   :  { %v1078_v53 = vshll.u32 %v2490_v47, %v1076_v54  ;;  %v1079_v36 = vshrl.u32 %v1061_v15, %v1077_v63  ;;  %v1082_v4 = vadd.s32 127, %v1081_v20  ;;  %v1003_v1 = vsel %vm996_vm5, %v999_v59, %v1002_v62 }
 0x188   :  { %v1164_v6 = vmul.u32 %v1157_v17, %v1148_v55  ;;  %vm1166_vm11 = vc.u32 %v2518_v56, %v2513_v2  ;;  %v1225_v50 = vsel %vm1224_vm0, %v1223_v8, 0  ;;  %v1004_v51 = vsel %vm993_vm12, nan, %v1003_v1 }
 0x189   :  { %v1080_v10 = vor.u32 %v1079_v36, %v1078_v53  ;;  %v1083_v13 = vshll.u32 %v1082_v4, 23  ;;  %v1168_v49 = vsel %vm1166_vm11, %v1167_v38, %v2514_v31  ;;  %v1092_v47 = vsel %vm1007_vm15, %v1091_v29, %v2473_v9  ;;  %1429 = vst [vmem:[#allocation2 + $0x38] sm:$0xff] %v1004_v51 }
 0x18a   :  { %v1169_v46 = vadd.s32 %v1168_v49, %v1164_v6  ;;  %v1227_v25 = vand.u32 31, %v1225_v50  ;;  %vm2543_vm13 = vcmp.le.f32.partialorder %v1005_v7, 0.7853982  ;;  %v2549_v12 = vadd.f32 %v1708_v40, %v2499_v3 }
 0x18b   :  { %v1084_v57 = vor.u32 4788187, %v1083_v13  ;;  %v1220_v11 = vand.u32 8388607, %v1213_v5  ;;  %v1087_v33 = vcvt.s32.f32 %v1080_v10  ;;  %v1094_v22 = vsel %vm2543_vm13, 0, %v1092_v47 }
 0x18c   :  { %v1170_v58 = vadd.s32 536870912, %v1169_v46  ;;  %v1228_v44 = vsub.s32 32, %v1227_v25  ;;  %v1226_v60 = vshrl.u32 %v1225_v50, 5  ;;  %v1239_v40 = vshll.u32 %v1642_v35, %v1227_v25 }
 0x18d   :  { %v1085_v9 = vand.u32 2147483647, %v1084_v57  ;;  %v1230_v37 = vshll.u32 %v1639_v21, %v1227_v25  ;;  %v1233_v14 = vshll.u32 %v1640_v27, %v1227_v25  ;;  %v1236_v28 = vshll.u32 %v1641_v30, %v1227_v25 }
 0x18e   :  { %v2555_v7 = vshrl.u32 %v1170_v58, 30  ;;  %v1231_v19 = vshrl.u32 %v1640_v27, %v1228_v44  ;;  %v1234_v26 = vshrl.u32 %v1641_v30, %v1228_v44  ;;  %v1237_v17 = vshrl.u32 %v1642_v35, %v1228_v44 }
 0x18f   :  { %v1088_v3 = vmul.f32 %v1087_v33, %v1085_v9  ;;  %v1240_v24 = vshrl.u32 %v1643_v41, %v1228_v44  ;;  %v1243_v42 = vshrl.u32 %v1644_v48, %v1228_v44  ;;  %v1098_v16 = vadd.s32 3, %v1094_v22 }
 0x190   :  { %v1172_v34 = vshll.u32 %v2555_v7, 30  ;;  %v1242_v8 = vshll.u32 %v1643_v41, %v1227_v25  ;;  %v1232_v23 = vor.u32 %v1231_v19, %v1230_v37  ;;  %v1235_v15 = vor.u32 %v1234_v26, %v1233_v14 }
 0x191   :  { %v1089_v31 = vxor.u32 2147483648, %v1088_v3  ;;  %v1241_v18 = vor.u32 %v1240_v24, %v1239_v40  ;;  %v1238_v54 = vor.u32 %v1237_v17, %v1236_v28  ;;  %v1221_v63 = vor.u32 8388608, %v1220_v11 }
 0x192   :  { %v2568_v32 = vsub.s32 %v1169_v46, %v1172_v34  ;;  %v1244_v20 = vor.u32 %v1243_v42, %v1242_v8  ;;  %v1320_v55 = vand.u32 2139095040, %v2549_v12  ;;  %v1229_v38 = vshrl.u32 %v1639_v21, %v1228_v44 }
 0x193   :  { %v1090_v0 = vsel %vm1007_vm15, %v1089_v31, %v1088_v3  ;;  %vm1248_vm1 = vcmp.lt.s32.totalorder %v1226_v60, 4  ;;  %vm1245_vm14 = vcmp.lt.s32.totalorder %v1226_v60, 1  ;;  %vm1247_vm3 = vcmp.lt.s32.totalorder %v1226_v60, 3 }
 0x194   :  { %v1093_v62 = vsel %vm2543_vm13, %v2275_v61, %v1090_v0  ;;  %v1175_v29 = vsub.s32 0, %v2568_v32  ;;  %v1254_v59 = vsel %vm1248_vm1, %v1241_v18, 920167782  ;;  %v1250_v36 = vsel %vm1248_vm1, %v1238_v54, 2102212464 }
 0x195   :  { %1596 = vcosq.f32 %v1093_v62  ;;  %v1253_v4 = vsel %vm1245_vm14, %v1232_v23, %v1235_v15  ;;  %v1099_v1 = vand.u32 3, %v1098_v16  ;;  %v1255_v6 = vsel %vm1247_vm3, %v1238_v54, %v1254_v59 }
 0x196   :  { %1598 = vsinq.f32 %v1093_v62  ;;  %v1487_v53 = vmin.u32 %v1175_v29, %v2568_v32  ;;  %v1257_v50 = vsel %vm1245_vm14, %v1235_v15, %v1238_v54  ;;  %v1258_v51 = vsel %vm1248_vm1, %v1244_v20, 1326507024 }
 0x197   :  { %vm1246_vm2 = vcmp.lt.s32.totalorder %v1226_v60, 2  ;;  %v1249_v13 = vsel %vm1245_vm14, %v1229_v38, %v1232_v23  ;;  %v1261_v49 = vshll.u32 %v1221_v63, 8  ;;  %v1251_v47 = vsel %vm1247_vm3, %v1235_v15, %v1250_v36 }
 0x198   :  { %v1177_v10 = vclz %v1487_v53  ;;  %v1256_v46 = vsel %vm1246_vm2, %v1253_v4, %v1255_v6  ;;  %v1259_v25 = vsel %vm1247_vm3, %v1241_v18, %v1258_v51  ;;  %v1321_v43 = vshrl.u32 %v1320_v55, 23 }
 0x199   :  { %v1260_v58 = vsel %vm1246_vm2, %v1257_v50, %v1259_v25  ;;  %v2584_v11 = vmul.u32.u64.low %v1261_v49, %v1256_v46  ;;  %v2585_v44 = vmul.u32.u64.high %v1261_v49, %v1256_v46, %v2584_v11  ;;  %vm1111_vm4 = vcmp.lt.s32.totalorder %v2400_v39, 0 }
 0x19a   :  { %v1488_v57 = vadd.s32 4294967294, %v1177_v10  ;;  %v2589_v9 = vmul.u32.u64.low %v1261_v49, %v1260_v58  ;;  %v2590_v33 = vmul.u32.u64.high %v1261_v49, %v1260_v58, %v2589_v9  ;;  %v1494_v22 = vadd.s32 4294967169, %v1321_v43 }
 0x19b   :  { %vm1100_vm10 = vcmp.lt.s32.totalorder %v1099_v1, 2  ;;  %vm1101_vm5 = vcmp.eq.s32.totalorder %v1099_v1, 0  ;;  %v1252_v19 = vsel %vm1246_vm2, %v1249_v13, %v1251_v47  ;;  %v1165_v26 = vadd.s32 %v2513_v2, %v2518_v56 }
 0x19c   :  { %vm1489_vm7 = vcmp.lt.s32.totalorder %v1488_v57, 0  ;;  %v1317_v3 = vand.u32 2147483647, %v2549_v12  ;;  %v1327_v17 = vadd.s32 1, %v1494_v22  ;;  %v1195_v34 = vsub.s32 4, %v2555_v7 }
 0x19d   :  { %v1180_v40 = vsel %vm1489_vm7, 0, %v1488_v57  ;;  %v1271_v37 = vadd.s32 1, %v2585_v44  ;;  %v1268_v31 = vmul.u32 %v1261_v49, %v1252_v19  ;;  %vm1270_vm12 = vc.u32 %v2590_v33, %v2584_v11 }
 0x19e   :  { %v1181_v24 = vsub.s32 32, %v1180_v40  ;;  %v1185_v42 = vsub.s32 4294967266, %v1180_v40  ;;  %v1182_v28 = vshll.u32 %v2568_v32, %v1180_v40  ;;  %vm1328_vm6 = vcmp.gt.s32.totalorder %v1327_v17, 0 }
 0x19f   :  { %v1597_v14 = vpop.eup %1596  ;;  %v1272_v18 = vsel %vm1270_vm12, %v1271_v37, %v2585_v44  ;;  %vm1104_vm15 = vcmp.eq.s32.totalorder %v1099_v1, 2  ;;  %v1329_v15 = vsel %vm1328_vm6, %v1327_v17, 0  ;;  %v1324_v32 = vand.u32 8388607, %v1317_v3 }
 0x1a0   :  { %v1599_v60 = vpop.eup %1598  ;;  %v1105_v2 = vxor.u32 2147483648, %v1597_v14  ;;  %v1183_v56 = vshrl.u32 %v1165_v26, %v1181_v24  ;;  %v1186_v16 = vadd.s32 127, %v1185_v42  ;;  %v1273_v23 = vadd.s32 %v1272_v18, %v1268_v31 }
 0x1a1   :  { %v1102_v8 = vxor.u32 2147483648, %v1599_v60  ;;  %v1196_v55 = vsel %vm1111_vm4, %v1195_v34, %v2555_v7  ;;  %v1331_v29 = vand.u32 31, %v1329_v15  ;;  %vm1097_vm9 = vweird.f32 %v2275_v61 }
 0x1a2   :  { %v1106_v54 = vsel %vm1104_vm15, %v1105_v2, %v1599_v60  ;;  %v1184_v0 = vor.u32 %v1183_v56, %v1182_v28  ;;  %v1187_v63 = vshll.u32 %v1186_v16, 23  ;;  %v1274_v62 = vadd.s32 536870912, %v1273_v23 }
 0x1a3   :  { %v1103_v20 = vsel %vm1101_vm5, %v1597_v14, %v1102_v8  ;;  %vm2612_vm0 = vcmp.le.f32.partialorder %v1109_v45, 0.7853982  ;;  %v1332_v6 = vsub.s32 32, %v1331_v29  ;;  %v1325_v51 = vor.u32 8388608, %v1324_v32 }
 0x1a4   :  { %v1107_v38 = vsel %vm1100_vm10, %v1103_v20, %v1106_v54  ;;  %v1188_v59 = vor.u32 4788187, %v1187_v63  ;;  %v2616_v4 = vshrl.u32 %v1274_v62, 30  ;;  %v1191_v50 = vcvt.s32.f32 %v1184_v0 }
 0x1a5   :  { %v1108_v53 = vsel %vm1097_vm9, nan, %v1107_v38  ;;  %v1198_v61 = vsel %vm2612_vm0, 0, %v1196_v55  ;;  %v1334_v10 = vshll.u32 %v1639_v21, %v1331_v29  ;;  %v1335_v45 = vshrl.u32 %v1640_v27, %v1332_v6 }
 0x1a6   :  { %1430 = vst.msk [vmem:[#allocation2 + $0x40] sm:$0xff] %vm1423_vm8, %v1108_v53  ;;  %v1189_v7 = vand.u32 2147483647, %v1188_v59  ;;  %v1276_v1 = vshll.u32 %v2616_v4, 30  ;;  %v1338_v49 = vshrl.u32 %v1641_v30, %v1332_v6  ;;  %v1341_v47 = vshrl.u32 %v1642_v35, %v1332_v6 }
 0x1a7   :  { %v1344_v46 = vshrl.u32 %v1643_v41, %v1332_v6  ;;  %v1330_v43 = vshrl.u32 %v1329_v15, 5  ;;  %v1337_v57 = vshll.u32 %v1640_v27, %v1331_v29  ;;  %v1340_v58 = vshll.u32 %v1641_v30, %v1331_v29 }
 0x1a8   :  { %v1192_v13 = vmul.f32 %v1191_v50, %v1189_v7  ;;  %v1277_v25 = vsub.s32 %v1273_v23, %v1276_v1  ;;  %v1336_v9 = vor.u32 %v1335_v45, %v1334_v10  ;;  %v1343_v22 = vshll.u32 %v1642_v35, %v1331_v29 }
 0x1a9   :  { %v1346_v19 = vshll.u32 %v1643_v41, %v1331_v29  ;;  %v1339_v40 = vor.u32 %v1338_v49, %v1337_v57  ;;  %v1342_v17 = vor.u32 %v1341_v47, %v1340_v58  ;;  %v1347_v24 = vshrl.u32 %v1644_v48, %v1332_v6 }
 0x1aa   :  { %v1193_v44 = vxor.u32 2147483648, %v1192_v13  ;;  %v1279_v26 = vsub.s32 0, %v1277_v25  ;;  %v1345_v34 = vor.u32 %v1344_v46, %v1343_v22  ;;  %v1202_v30 = vadd.s32 3, %v1198_v61 }
 0x1ab   :  { %v1348_v14 = vor.u32 %v1347_v24, %v1346_v19  ;;  %vm1349_vm11 = vcmp.lt.s32.totalorder %v1330_v43, 1  ;;  %vm1352_vm13 = vcmp.lt.s32.totalorder %v1330_v43, 4  ;;  %v1365_v35 = vshll.u32 %v1325_v51, 8 }
 0x1ac   :  { %v1194_v42 = vsel %vm1111_vm4, %v1193_v44, %v1192_v13  ;;  %v1491_v37 = vmin.u32 %v1279_v26, %v1277_v25  ;;  %v1354_v28 = vsel %vm1352_vm13, %v1342_v17, 2102212464  ;;  %v1357_v31 = vsel %vm1349_vm11, %v1336_v9, %v1339_v40 }
 0x1ad   :  { %v1197_v27 = vsel %vm2612_vm0, %v2400_v39, %v1194_v42  ;;  %v1333_v48 = vshrl.u32 %v1639_v21, %v1332_v6  ;;  %vm1351_vm1 = vcmp.lt.s32.totalorder %v1330_v43, 3  ;;  %v1358_v60 = vsel %vm1352_vm13, %v1345_v34, 920167782 }
 0x1ae   :  { %1600 = vcosq.f32 %v1197_v27  ;;  %v1281_v41 = vclz %v1491_v37  ;;  %v1361_v2 = vsel %vm1349_vm11, %v1339_v40, %v1342_v17  ;;  %vm1350_vm14 = vcmp.lt.s32.totalorder %v1330_v43, 2 }
 0x1af   :  { %1602 = vsinq.f32 %v1197_v27  ;;  %v1359_v16 = vsel %vm1351_vm1, %v1342_v17, %v1358_v60  ;;  %v1362_v18 = vsel %vm1352_vm13, %v1348_v14, 1326507024  ;;  %v1353_v8 = vsel %vm1349_vm11, %v1333_v48, %v1336_v9 }
 0x1b0   :  { %v1492_v56 = vadd.s32 4294967294, %v1281_v41  ;;  %v1355_v23 = vsel %vm1351_vm1, %v1339_v40, %v1354_v28  ;;  %v1360_v15 = vsel %vm1350_vm14, %v1357_v31, %v1359_v16  ;;  %v1363_v54 = vsel %vm1351_vm1, %v1345_v34, %v1362_v18 }
 0x1b1   :  { %v1364_v0 = vsel %vm1350_vm14, %v1361_v2, %v1363_v54  ;;  %v2638_v63 = vmul.u32.u64.low %v1365_v35, %v1360_v15  ;;  %v2639_v32 = vmul.u32.u64.high %v1365_v35, %v1360_v15, %v2638_v63  ;;  %v1269_v21 = vadd.s32 %v2584_v11, %v2590_v33 }
 0x1b2   :  { %vm1493_vm3 = vcmp.lt.s32.totalorder %v1492_v56, 0  ;;  %v2641_v55 = vmul.u32.u64.low %v1365_v35, %v1364_v0  ;;  %v2642_v62 = vmul.u32.u64.high %v1365_v35, %v1364_v0, %v2641_v55  ;;  %v1356_v59 = vsel %vm1350_vm14, %v1353_v8, %v1355_v23 }
 0x1b3   :  { %v1284_v20 = vsel %vm1493_vm3, 0, %v1492_v56  ;;  %v1203_v53 = vand.u32 3, %v1202_v30  ;;  %v1375_v50 = vadd.s32 1, %v2639_v32  ;;  %v1372_v1 = vmul.u32 %v1365_v35, %v1356_v59 }
 0x1b4   :  { %v1285_v29 = vsub.s32 32, %v1284_v20  ;;  %v1289_v38 = vsub.s32 4294967266, %v1284_v20  ;;  %v1286_v36 = vshll.u32 %v1277_v25, %v1284_v20  ;;  %vm1374_vm2 = vc.u32 %v2642_v62, %v2638_v63 }
 0x1b5   :  { %v1376_v49 = vsel %vm1374_vm2, %v1375_v50, %v2639_v32  ;;  %vm1208_vm4 = vcmp.eq.s32.totalorder %v1203_v53, 2  ;;  %vm1205_vm10 = vcmp.eq.s32.totalorder %v1203_v53, 0  ;;  %vm1204_vm5 = vcmp.lt.s32.totalorder %v1203_v53, 2 }
 0x1b6   :  { %v1287_v6 = vshrl.u32 %v1269_v21, %v1285_v29  ;;  %v1290_v7 = vadd.s32 127, %v1289_v38  ;;  %v1377_v33 = vadd.s32 %v1376_v49, %v1372_v1  ;;  %vm1201_vm7 = vweird.f32 %v2400_v39 }
 0x1b7   :  { %v1299_v26 = vsub.s32 4, %v2616_v4  ;;  %vm1215_vm12 = vcmp.lt.s32.totalorder %v2466_v52, 0  ;;  %vm1214_vm6 = vcmp.le.f32.partialorder %v1213_v5, 0.7853982  ;;  %v1373_v48 = vadd.s32 %v2638_v63, %v2642_v62 }
 0x1b8   :  { %v1601_v61 = vpop.eup %1600  ;;  %v1288_v45 = vor.u32 %v1287_v6, %v1286_v36  ;;  %v1291_v13 = vshll.u32 %v1290_v7, 23  ;;  %v1378_v43 = vadd.s32 536870912, %v1377_v33  ;;  %vm1305_vm13 = vweird.f32 %v2466_v52 }
 0x1b9   :  { %v1603_v51 = vpop.eup %1602  ;;  %v1209_v10 = vxor.u32 2147483648, %v1601_v61  ;;  %v1300_v39 = vsel %vm1215_vm12, %v1299_v26, %v2616_v4  ;;  %vm1319_vm1 = vcmp.lt.s32.totalorder %v2549_v12, 0  ;;  %vm1318_vm14 = vcmp.le.f32.partialorder %v1317_v3, 0.7853982 }
 0x1ba   :  { %v1206_v11 = vxor.u32 2147483648, %v1603_v51  ;;  %v1292_v46 = vor.u32 4788187, %v1291_v13  ;;  %v1295_v44 = vcvt.s32.f32 %v1288_v45  ;;  %v1379_v22 = vshrl.u32 %v1378_v43, 30 }
 0x1bb   :  { %v1210_v47 = vsel %vm1208_vm4, %v1209_v10, %v1603_v51  ;;  %v1302_v30 = vsel %vm1214_vm6, 0, %v1300_v39 }
 0x1bc   :  { %v1207_v25 = vsel %vm1205_vm10, %v1601_v61, %v1206_v11  ;;  %v1293_v58 = vand.u32 2147483647, %v1292_v46  ;;  %v1380_v40 = vshll.u32 %v1379_v22, 30  ;;  %v1306_v35 = vadd.s32 3, %v1302_v30 }
 0x1bd   :  { %v1211_v57 = vsel %vm1204_vm5, %v1207_v25, %v1210_v47  ;;  %v1403_v38 = vsub.s32 4, %v1379_v22  ;;  %vm1409_vm10 = vweird.f32 %v2549_v12 }
 0x1be   :  { %v1212_v9 = vsel %vm1201_vm7, nan, %v1211_v57  ;;  %v1296_v19 = vmul.f32 %v1295_v44, %v1293_v58  ;;  %v1381_v24 = vsub.s32 %v1377_v33, %v1380_v40  ;;  %v1307_v28 = vand.u32 3, %v1306_v35 }
 0x1bf   :  { %1431 = vst [vmem:[#allocation2 + $0x48] sm:$0xff] %v1212_v9  ;;  %v1404_v36 = vsel %vm1319_vm1, %v1403_v38, %v1379_v22 }
 0x1c0   :  { %v1297_v17 = vxor.u32 2147483648, %v1296_v19  ;;  %v1383_v27 = vsub.s32 0, %v1381_v24  ;;  %vm1312_vm9 = vcmp.eq.s32.totalorder %v1307_v28, 2  ;;  %vm1309_vm0 = vcmp.eq.s32.totalorder %v1307_v28, 0 }
 0x1c1   :  { %vm1308_vm11 = vcmp.lt.s32.totalorder %v1307_v28, 2 }
 0x1c2   :  { %v1298_v42 = vsel %vm1215_vm12, %v1297_v17, %v1296_v19  ;;  %v1495_v37 = vmin.u32 %v1383_v27, %v1381_v24 }
 0x1c3   :  { %v1301_v34 = vsel %vm1214_vm6, %v2466_v52, %v1298_v42  ;;  %v1406_v52 = vsel %vm1318_vm14, 0, %v1404_v36 }
 0x1c4   :  { %1604 = vcosq.f32 %v1301_v34  ;;  %v1385_v14 = vclz %v1495_v37  ;;  %v1410_v7 = vadd.s32 3, %v1406_v52 }
 0x1c5   :  { %1606 = vsinq.f32 %v1301_v34 }
 0x1c6   :  { %v1496_v41 = vadd.s32 4294967294, %v1385_v14  ;;  %v1411_v50 = vand.u32 3, %v1410_v7 }
 0x1c8   :  { %vm1497_vm15 = vcmp.lt.s32.totalorder %v1496_v41, 0  ;;  %vm1416_vm3 = vcmp.eq.s32.totalorder %v1411_v50, 2  ;;  %vm1413_vm2 = vcmp.eq.s32.totalorder %v1411_v50, 0  ;;  %vm1412_vm4 = vcmp.lt.s32.totalorder %v1411_v50, 2 }
 0x1c9   :  { %v1388_v31 = vsel %vm1497_vm15, 0, %v1496_v41 }
 0x1ca   :  { %v1389_v60 = vsub.s32 32, %v1388_v31  ;;  %v1393_v5 = vsub.s32 4294967266, %v1388_v31  ;;  %v1390_v16 = vshll.u32 %v1381_v24, %v1388_v31 }
 0x1cc   :  { %v1391_v18 = vshrl.u32 %v1373_v48, %v1389_v60  ;;  %v1394_v8 = vadd.s32 127, %v1393_v5 }
 0x1ce   :  { %v1605_v2 = vpop.eup %1604  ;;  %v1392_v54 = vor.u32 %v1391_v18, %v1390_v16  ;;  %v1395_v0 = vshll.u32 %v1394_v8, 23 }
 0x1cf   :  { %v1607_v56 = vpop.eup %1606  ;;  %v1313_v4 = vxor.u32 2147483648, %v1605_v2 }
 0x1d0   :  { %v1310_v23 = vxor.u32 2147483648, %v1607_v56  ;;  %v1396_v63 = vor.u32 4788187, %v1395_v0  ;;  %v1399_v21 = vcvt.s32.f32 %v1392_v54 }
 0x1d1   :  { %v1314_v15 = vsel %vm1312_vm9, %v1313_v4, %v1607_v56 }
 0x1d2   :  { %v1311_v32 = vsel %vm1309_vm0, %v1605_v2, %v1310_v23  ;;  %v1397_v62 = vand.u32 2147483647, %v1396_v63 }
 0x1d3   :  { %v1315_v20 = vsel %vm1308_vm11, %v1311_v32, %v1314_v15 }
 0x1d4   :  { %v1316_v55 = vsel %vm1305_vm13, nan, %v1315_v20  ;;  %v1400_v29 = vmul.f32 %v1399_v21, %v1397_v62 }
 0x1d5   :  { %1432 = vst [vmem:[#allocation2 + $0x50] sm:$0xff] %v1316_v55 }
 0x1d6   :  { %v1401_v59 = vxor.u32 2147483648, %v1400_v29 }
 0x1d8   :  { %v1402_v53 = vsel %vm1319_vm1, %v1401_v59, %v1400_v29 }
 0x1d9   :  { %v1405_v6 = vsel %vm1318_vm14, %v2549_v12, %v1402_v53 }
 0x1da   :  { %1608 = vcosq.f32 %v1405_v6 }
 0x1db   :  { %1610 = vsinq.f32 %v1405_v6 }
 0x1e4   :  { %v1609_v61 = vpop.eup %1608 }
 0x1e5   :  { %v1611_v1 = vpop.eup %1610  ;;  %v1417_v51 = vxor.u32 2147483648, %v1609_v61 }
 0x1e6   :  { %v1414_v10 = vxor.u32 2147483648, %v1611_v1 }
 0x1e7   :  { %v1418_v45 = vsel %vm1416_vm3, %v1417_v51, %v1611_v1 }
 0x1e8   :  { %v1415_v3 = vsel %vm1413_vm2, %v1609_v61, %v1414_v10 }
 0x1e9   :  { %v1419_v13 = vsel %vm1412_vm4, %v1415_v3, %v1418_v45 }
 0x1ea   :  { %v1420_v49 = vsel %vm1409_vm10, nan, %v1419_v13 }
 0x1eb   :  { %1433 = vst.msk [vmem:[#allocation2 + $0x58] sm:$0xff] %vm1423_vm8, %v1420_v49 }
 0x1ec   :  { %1623 = shalt.err (!%p1620_p4)
}
 0x1ed   :  { %s1624_s22 = scalar_lea.hbm %s2678_s2, 1536 }
 0x1ee   :  { %p1625_p5 = scmp.ne.s32.totalorder %s2678_s2, %s1624_s22  ;;  %p1628_p6 = scmp.lt.u32.totalorder %s1624_s22, %s2678_s2 }
 0x1f0   :  { %p1630_p7 = pnand %p1628_p6, %p1625_p5 }
 0x1f2   :  { %1633 = shalt.err (!%p1630_p7)
}
 0x1f3   :  { %s1646_s27 = smov 384   ;;  %s1647_s28 = smov 24  }
 0x1f4   :  { %1445 = dma.vmem_to_hbm [thread:$0]  %s1440_s18, 1536, %s2678_s2, [#allocation3], %s1646_s27, %s1646_s27, %s1647_s28  }
 0x1f5   :  { %1634 = dma.done.wait [#allocation3], 1536  }
 0x1f6   :  { %1635 = vsyncadd [#allocation3], 4294965760 }
 0x1f7   :  { %1449 = vsyncpa [#allocation3], 1 }

</bundles_post_ra>
